<compile_context>
chip_gen: v7x
topology: tpu7x:2x2x1
jax: 0.10.0
libtpu: 0.0.40
codegen_flags: <defaults>
</compile_context>

<pallas_src>
import functools

import jax
import jax.numpy as jnp
from jax.experimental import pallas as pl
from jax.experimental.pallas import tpu as pltpu

EPS = 1e-5
TILE_M_MAX = 4096                    # lanes per M tile (multiple of 128); sweep 2048..8192
HALO = 128                           # one 128-lane block of halo each side (needs Wp+1 <= 128)
VMEM_LIMIT = 32 * 1024 * 1024        # explicit scoped-VMEM budget (fits v5e/v6e/v7x)


def _round_up(x, m):
    return (x + m - 1) // m * m


# --------------------------------------------------------------------------- #
# Shared pieces                                                                #
# --------------------------------------------------------------------------- #
def _tap_accumulate(window_bf16, w_ref, offsets, tile_m):
    """window_bf16: (Cin, HALO + tile_m + HALO) bf16.  Returns f32 (Cout, tile_m).

    9 small (Cout,Cin)@(Cin,TILE) MXU matmuls with f32 accumulation.  At
    Cin,Cout<=8 the MXU is <1% utilized and is not the bottleneck, so taps are
    NOT merged into a K=9*Cin dot (the sublane re-pack would cost more than the
    sub-128 K saves).  If a bundle dump ever shows vld/XLU saturation from the
    unaligned tap slices, restructure the slicing -- not the matmul.
    """
    cout = w_ref.shape[1]
    acc = jnp.zeros((cout, tile_m), jnp.float32)
    for t, off in enumerate(offsets):
        tap = window_bf16[:, HALO + off: HALO + off + tile_m]
        acc = acc + jnp.dot(w_ref[t], tap, preferred_element_type=jnp.float32)
    return acc


def _stat_write(st_ref, acc, mask_f32):
    """Masked per-channel sum / sum-of-squares partials for batch-norm stats."""
    masked = acc * mask_f32                                  # zero padding / tail lanes
    st_ref[0] = jnp.concatenate(
        [jnp.sum(masked, axis=1, keepdims=True),             # (Cout, 1) sum
         jnp.sum(masked * acc, axis=1, keepdims=True)],      # (Cout, 1) sum of squares
        axis=1)                                              # -> (Cout, 2), one tiny write


def _halo_specs(c, tile_m, mp_pad):
    """(c, 128) left halo, (c, tile_m) current, (c, 128) right halo BlockSpecs."""
    bpt = tile_m // 128              # 128-lane blocks per tile
    nblk = mp_pad // 128             # total 128-lane blocks
    left = pl.BlockSpec((c, 128), lambda t: (0, jnp.maximum(t * bpt - 1, 0)))
    cur = pl.BlockSpec((c, tile_m), lambda t: (0, t))
    right = pl.BlockSpec((c, 128), lambda t: (0, jnp.minimum((t + 1) * bpt, nblk - 1)))
    # Clamping at t=0 / t=nt-1 only ever feeds output lanes inside the padding
    # ring / alignment tail, which are masked out of the stats and discarded.
    return left, cur, right


# --------------------------------------------------------------------------- #
# Kernel A: conv1 3x3 (stride=1, pad=1, no bias) + masked BN partial stats     #
# --------------------------------------------------------------------------- #
def _conv1_kernel(xl_ref, xc_ref, xr_ref, w_ref, mc_ref, y_ref, st_ref,
                  *, offsets, tile_m):
    # x is f32 in HBM (it doubles as the residual); cast the window in-register.
    window = jnp.concatenate([xl_ref[...], xc_ref[...], xr_ref[...]],
                             axis=1).astype(jnp.bfloat16)
    acc = _tap_accumulate(window, w_ref, offsets, tile_m)
    y_ref[...] = acc.astype(y_ref.dtype)                     # bf16, lane-dense store
    _stat_write(st_ref, acc, mc_ref[...].astype(jnp.float32))


def conv1_bn_stats(x_flat, w_taps, mask, wp, tile_m):
    cin, mp_pad = x_flat.shape
    _, cout, _ = w_taps.shape
    nt = mp_pad // tile_m
    offs = tuple((kh - 1) * wp + (kw - 1) for kh in range(3) for kw in range(3))
    kern = functools.partial(_conv1_kernel, offsets=offs, tile_m=tile_m)
    xl, xc, xr = _halo_specs(cin, tile_m, mp_pad)
    _, mc, _ = _halo_specs(1, tile_m, mp_pad)
    return pl.pallas_call(
        kern,
        out_shape=(
            jax.ShapeDtypeStruct((cout, mp_pad), jnp.bfloat16),
            jax.ShapeDtypeStruct((nt, cout, 2), jnp.float32),   # [:, :, 0]=sum [:, :, 1]=sumsq
        ),
        grid=(nt,),
        in_specs=[
            xl, xc, xr,                                          # 128-lane halos + current tile
            pl.BlockSpec((9, cout, cin), lambda t: (0, 0, 0)),   # weights resident all grid
            mc,                                                  # validity mask (current tile)
        ],
        out_specs=(
            pl.BlockSpec((cout, tile_m), lambda t: (0, t)),
            pl.BlockSpec((1, cout, 2), lambda t: (t, 0, 0)),
        ),
        compiler_params=pltpu.CompilerParams(
            dimension_semantics=("parallel",),
            vmem_limit_bytes=VMEM_LIMIT),
    )(x_flat, x_flat, x_flat, w_taps, mask)


# --------------------------------------------------------------------------- #
# Kernel B: BN1 + ReLU + mask fused into conv2's load path, + BN2 partial stats#
# --------------------------------------------------------------------------- #
def _bn_relu_conv2_kernel(yl_ref, yc_ref, yr_ref, ml_ref, mc_ref, mr_ref,
                          sc_ref, sh_ref, w_ref, y_ref, st_ref,
                          *, offsets, tile_m):
    win = jnp.concatenate([yl_ref[...], yc_ref[...], yr_ref[...]],
                          axis=1).astype(jnp.float32)
    m_cur = mc_ref[...].astype(jnp.float32)
    wmask = jnp.concatenate([ml_ref[...].astype(jnp.float32), m_cur,
                             mr_ref[...].astype(jnp.float32)], axis=1)
    # h = relu(BN1(conv1_out)) with padding lanes forced to exactly zero so the
    # 3x3 taps near image borders see true zero padding (h never touches HBM).
    h = jnp.maximum(win * sc_ref[...] + sh_ref[...], 0.0) * wmask
    acc = _tap_accumulate(h.astype(jnp.bfloat16), w_ref, offsets, tile_m)
    y_ref[...] = acc.astype(y_ref.dtype)                     # bf16, lane-dense store
    _stat_write(st_ref, acc, m_cur)


def bn_relu_conv2_bn_stats(y0, mask, scale, shift, w_taps, wp, tile_m):
    c1, mp_pad = y0.shape
    _, cout, _ = w_taps.shape
    nt = mp_pad // tile_m
    offs = tuple((kh - 1) * wp + (kw - 1) for kh in range(3) for kw in range(3))
    kern = functools.partial(_bn_relu_conv2_kernel, offsets=offs, tile_m=tile_m)
    yl, yc, yr = _halo_specs(c1, tile_m, mp_pad)
    ml, mc, mr = _halo_specs(1, tile_m, mp_pad)
    return pl.pallas_call(
        kern,
        out_shape=(
            jax.ShapeDtypeStruct((cout, mp_pad), jnp.bfloat16),
            jax.ShapeDtypeStruct((nt, cout, 2), jnp.float32),
        ),
        grid=(nt,),
        in_specs=[
            yl, yc, yr,                                          # conv1 output window
            ml, mc, mr,                                          # validity mask window
            pl.BlockSpec((c1, 1), lambda t: (0, 0)),             # BN1 scale (fetched once)
            pl.BlockSpec((c1, 1), lambda t: (0, 0)),             # BN1 shift (fetched once)
            pl.BlockSpec((9, cout, c1), lambda t: (0, 0, 0)),    # conv2 weights resident
        ],
        out_specs=(
            pl.BlockSpec((cout, tile_m), lambda t: (0, t)),
            pl.BlockSpec((1, cout, 2), lambda t: (t, 0, 0)),
        ),
        compiler_params=pltpu.CompilerParams(
            dimension_semantics=("parallel",),
            vmem_limit_bytes=VMEM_LIMIT),
    )(y0, y0, y0, mask, mask, mask, scale, shift, w_taps)


# --------------------------------------------------------------------------- #
# Kernel C: BN2 normalize + identity residual add + ReLU                       #
# --------------------------------------------------------------------------- #
def _bn_add_relu_kernel(y_ref, r_ref, sc_ref, sh_ref, o_ref):
    o_ref[...] = jnp.maximum(
        y_ref[...].astype(jnp.float32) * sc_ref[...] + sh_ref[...] + r_ref[...], 0.0)


def bn_add_relu(y1, res, scale, shift, tile_m):
    c, mp_pad = y1.shape
    nt = mp_pad // tile_m
    return pl.pallas_call(
        _bn_add_relu_kernel,
        out_shape=jax.ShapeDtypeStruct((c, mp_pad), jnp.float32),
        grid=(nt,),
        in_specs=[
            pl.BlockSpec((c, tile_m), lambda t: (0, t)),
            pl.BlockSpec((c, tile_m), lambda t: (0, t)),
            pl.BlockSpec((c, 1), lambda t: (0, 0)),
            pl.BlockSpec((c, 1), lambda t: (0, 0)),
        ],
        out_specs=pl.BlockSpec((c, tile_m), lambda t: (0, t)),
        compiler_params=pltpu.CompilerParams(
            dimension_semantics=("parallel",),
            vmem_limit_bytes=VMEM_LIMIT),
    )(y1, res, scale, shift)


# ----------------------------------------------------------------- forward --
@jax.jit
def pruned_building_block_forward(x_nchw, centroids0, mapping0, gamma0, beta0,
                                  centroids1, mapping1, gamma1, beta1):
    N, Cin, H, W = x_nchw.shape
    Hp, Wp = H + 2, W + 2
    Mp = N * Hp * Wp
    m_valid = float(N * H * W)

    assert Wp + 1 <= HALO, "128-lane halo scheme requires W <= 125"
    tile_m = min(TILE_M_MAX, _round_up(Mp, 128))       # big tiles; shrink for tiny inputs
    mp_pad = _round_up(Mp, tile_m)

    def to_flat(t):  # (N,C,H,W) -> (C, mp_pad): channels-first, spatially zero padded
        tp = jnp.pad(t, ((0, 0), (0, 0), (1, 1), (1, 1)))
        tf = jnp.transpose(tp, (1, 0, 2, 3)).reshape(t.shape[1], Mp)
        return jnp.pad(tf, ((0, 0), (0, mp_pad - Mp)))

    # Single f32 flat copy: MXU operand (cast in-kernel) AND the residual for kernel C.
    x_flat = to_flat(x_nchw.astype(jnp.float32))

    # 1.0 at real output pixels, 0.0 at the padding ring / alignment tail (bf16, exact).
    row_ok = jnp.pad(jnp.ones((H,), jnp.float32), (1, 1))
    col_ok = jnp.pad(jnp.ones((W,), jnp.float32), (1, 1))
    mask = (row_ok[:, None] * col_ok[None, :]).reshape(1, Hp * Wp)
    mask = jnp.pad(jnp.tile(mask, (1, N)), ((0, 0), (0, mp_pad - Mp))).astype(jnp.bfloat16)

    def fold_weights(centroids, mapping):
        w = centroids[mapping]                         # cluster gather folded into weights
        w = jnp.transpose(w, (2, 3, 0, 1))             # (3, 3, Cout, Cin)
        return w.reshape(9, w.shape[2], w.shape[3]).astype(jnp.bfloat16)

    def bn_affine(partials, gamma, beta):
        sums = jnp.sum(partials[:, :, 0], axis=0)
        sqs = jnp.sum(partials[:, :, 1], axis=0)
        mean = sums / m_valid
        # E[x^2]-E[x]^2 in f32: fine for BN-scale conv activations (clamped >=0).
        var = jnp.maximum(sqs / m_valid - mean * mean, 0.0)
        scale = gamma * jax.lax.rsqrt(var + EPS)
        shift = beta - mean * scale
        return scale[:, None], shift[:, None]

    # ---- layer 1: conv3x3 + fused masked BN stats ----
    w0 = fold_weights(centroids0, mapping0)
    y0, st0 = conv1_bn_stats(x_flat, w0, mask, Wp, tile_m)
    sc0, sh0 = bn_affine(st0, gamma0, beta0)

    # ---- layer 2: BN1+ReLU+mask fused into conv3x3 load path, + BN2 stats ----
    w1 = fold_weights(centroids1, mapping1)
    C2 = w1.shape[1]
    assert C2 == Cin, "stride=1 identity skip requires out_channels == in_channels"
    y1, st1 = bn_relu_conv2_bn_stats(y0, mask, sc0, sh0, w1, Wp, tile_m)
    sc1, sh1 = bn_affine(st1, gamma1, beta1)

    # ---- BN2 + identity residual + ReLU ----
    out_flat = bn_add_relu(y1, x_flat, sc1, sh1, tile_m)

    out = out_flat[:, :Mp].reshape(C2, N, Hp, Wp)[:, :, 1:H + 1, 1:W + 1]
    return jnp.transpose(out, (1, 0, 2, 3))            # back to NCHW


# -------------------------------------------------------------------- main --
if __name__ == "__main__":
    key = jax.random.PRNGKey(0)
    k_x, k_c0, k_c1 = jax.random.split(key, 3)

    N, Cin, H, W = 2, 4, 16, 16
    x = jax.random.normal(k_x, (N, Cin, H, W), dtype=jnp.float32)

    # convs_params[0] = (in_channels=4, centroids0, cluster_mapping0)
    centroids0 = jax.random.normal(k_c0, (3, Cin, 3, 3), dtype=jnp.float32) * 0.1
    mapping0 = jnp.array([0, 1, 2, 0, 1, 2, 0, 1], dtype=jnp.int32)   # -> 8 channels
    C1 = mapping0.shape[0]

    # convs_params[1] = (in_channels=8, centroids1, cluster_mapping1)
    centroids1 = jax.random.normal(k_c1, (3, C1, 3, 3), dtype=jnp.float32) * 0.1
    mapping1 = jnp.array([0, 1, 2, 0], dtype=jnp.int32)               # -> 4 channels (== Cin)
    C2 = mapping1.shape[0]

    # BatchNorm2d default init: gamma=1, beta=0.
    gamma0 = jnp.ones((C1,), jnp.float32)
    beta0 = jnp.zeros((C1,), jnp.float32)
    gamma1 = jnp.ones((C2,), jnp.float32)
    beta1 = jnp.zeros((C2,), jnp.float32)

    out = pruned_building_block_forward(x, centroids0, mapping0, gamma0, beta0,
                                        centroids1, mapping1, gamma1, beta1)
    jax.block_until_ready(out)
    assert out.shape == (N, C2, H, W)
    print("KERNEL_OK")
</pallas_src>

<mosaic_0001>
module attributes {stable_mosaic.version = 11 : i64} {
  func.func @_conv1_kernel(%arg0: i32, %arg1: memref<4x128xf32, #tpu.memory_space<vmem>>, %arg2: memref<4x768xf32, #tpu.memory_space<vmem>>, %arg3: memref<4x128xf32, #tpu.memory_space<vmem>>, %arg4: memref<9x8x4xbf16, #tpu.memory_space<vmem>>, %arg5: memref<1x768xbf16, #tpu.memory_space<vmem>>, %arg6: memref<8x768xbf16, #tpu.memory_space<vmem>>, %arg7: memref<1x8x2xf32, #tpu.memory_space<vmem>>) attributes {dimension_semantics = [#tpu.dimension_semantics<parallel>], iteration_bounds = array<i64: 1>, scalar_prefetch = 0 : i64, scratch_operands = 0 : i64, tpu.core_type = #tpu.core_type<tc>, window_params = [{transform_indices = @transform_0, window_bounds = array<i64: 4, 128>}, {transform_indices = @transform_1, window_bounds = array<i64: 4, 768>}, {transform_indices = @transform_2, window_bounds = array<i64: 4, 128>}, {pipeline_mode = #tpu.pipeline_mode<synchronous>, transform_indices = @transform_3, window_bounds = array<i64: 9, 8, 4>}, {transform_indices = @transform_4, window_bounds = array<i64: 1, 768>}, {transform_indices = @transform_5, window_bounds = array<i64: 8, 768>}, {transform_indices = @transform_6, window_bounds = array<i64: 1, 8, 2>}]} {
    %c0 = arith.constant 0 : index
    %c0_0 = arith.constant 0 : index
    %0 = vector.load %arg1[%c0, %c0_0] : memref<4x128xf32, #tpu.memory_space<vmem>>, vector<4x128xf32>
    %c0_1 = arith.constant 0 : index
    %c0_2 = arith.constant 0 : index
    %1 = vector.load %arg2[%c0_1, %c0_2] : memref<4x768xf32, #tpu.memory_space<vmem>>, vector<4x768xf32>
    %c0_3 = arith.constant 0 : index
    %c0_4 = arith.constant 0 : index
    %2 = vector.load %arg3[%c0_3, %c0_4] : memref<4x128xf32, #tpu.memory_space<vmem>>, vector<4x128xf32>
    %3 = tpu.concatenate %0, %1, %2 in 1 : vector<4x128xf32>, vector<4x768xf32>, vector<4x128xf32> -> vector<4x1024xf32>
    %4 = arith.truncf %3 : vector<4x1024xf32> to vector<4x1024xbf16>
    %cst = arith.constant 0.000000e+00 : f32
    %5 = vector.broadcast %cst : f32 to vector<8x768xf32>
    %6 = vector.extract_strided_slice %4 {offsets = [0, 109], sizes = [4, 768], strides = [1, 1]} : vector<4x1024xbf16> to vector<4x768xbf16>
    %c0_5 = arith.constant 0 : index
    %c0_6 = arith.constant 0 : index
    %c0_7 = arith.constant 0 : index
    %7 = vector.load %arg4[%c0_5, %c0_6, %c0_7] : memref<9x8x4xbf16, #tpu.memory_space<vmem>>, vector<1x8x4xbf16>
    %8 = vector.shape_cast %7 : vector<1x8x4xbf16> to vector<8x4xbf16>
    %cst_8 = arith.constant dense<0.000000e+00> : vector<8x768xf32>
    %9 = tpu.matmul %8, %6, %cst_8 {dimension_numbers = #tpu.dot_dimension_numbers<[1], [0], [0], [1], [0, 0, 1, 1], [], []>} : vector<8x4xbf16>, vector<4x768xbf16>, vector<8x768xf32> -> vector<8x768xf32>
    %10 = arith.addf %5, %9 : vector<8x768xf32>
    %11 = vector.extract_strided_slice %4 {offsets = [0, 110], sizes = [4, 768], strides = [1, 1]} : vector<4x1024xbf16> to vector<4x768xbf16>
    %c1 = arith.constant 1 : index
    %c0_9 = arith.constant 0 : index
    %c0_10 = arith.constant 0 : index
    %12 = vector.load %arg4[%c1, %c0_9, %c0_10] : memref<9x8x4xbf16, #tpu.memory_space<vmem>>, vector<1x8x4xbf16>
    %13 = vector.shape_cast %12 : vector<1x8x4xbf16> to vector<8x4xbf16>
    %cst_11 = arith.constant dense<0.000000e+00> : vector<8x768xf32>
    %14 = tpu.matmul %13, %11, %cst_11 {dimension_numbers = #tpu.dot_dimension_numbers<[1], [0], [0], [1], [0, 0, 1, 1], [], []>} : vector<8x4xbf16>, vector<4x768xbf16>, vector<8x768xf32> -> vector<8x768xf32>
    %15 = arith.addf %10, %14 : vector<8x768xf32>
    %16 = vector.extract_strided_slice %4 {offsets = [0, 111], sizes = [4, 768], strides = [1, 1]} : vector<4x1024xbf16> to vector<4x768xbf16>
    %c2 = arith.constant 2 : index
    %c0_12 = arith.constant 0 : index
    %c0_13 = arith.constant 0 : index
    %17 = vector.load %arg4[%c2, %c0_12, %c0_13] : memref<9x8x4xbf16, #tpu.memory_space<vmem>>, vector<1x8x4xbf16>
    %18 = vector.shape_cast %17 : vector<1x8x4xbf16> to vector<8x4xbf16>
    %cst_14 = arith.constant dense<0.000000e+00> : vector<8x768xf32>
    %19 = tpu.matmul %18, %16, %cst_14 {dimension_numbers = #tpu.dot_dimension_numbers<[1], [0], [0], [1], [0, 0, 1, 1], [], []>} : vector<8x4xbf16>, vector<4x768xbf16>, vector<8x768xf32> -> vector<8x768xf32>
    %20 = arith.addf %15, %19 : vector<8x768xf32>
    %21 = vector.extract_strided_slice %4 {offsets = [0, 127], sizes = [4, 768], strides = [1, 1]} : vector<4x1024xbf16> to vector<4x768xbf16>
    %c3 = arith.constant 3 : index
    %c0_15 = arith.constant 0 : index
    %c0_16 = arith.constant 0 : index
    %22 = vector.load %arg4[%c3, %c0_15, %c0_16] : memref<9x8x4xbf16, #tpu.memory_space<vmem>>, vector<1x8x4xbf16>
    %23 = vector.shape_cast %22 : vector<1x8x4xbf16> to vector<8x4xbf16>
    %cst_17 = arith.constant dense<0.000000e+00> : vector<8x768xf32>
    %24 = tpu.matmul %23, %21, %cst_17 {dimension_numbers = #tpu.dot_dimension_numbers<[1], [0], [0], [1], [0, 0, 1, 1], [], []>} : vector<8x4xbf16>, vector<4x768xbf16>, vector<8x768xf32> -> vector<8x768xf32>
    %25 = arith.addf %20, %24 : vector<8x768xf32>
    %26 = vector.extract_strided_slice %4 {offsets = [0, 128], sizes = [4, 768], strides = [1, 1]} : vector<4x1024xbf16> to vector<4x768xbf16>
    %c4 = arith.constant 4 : index
    %c0_18 = arith.constant 0 : index
    %c0_19 = arith.constant 0 : index
    %27 = vector.load %arg4[%c4, %c0_18, %c0_19] : memref<9x8x4xbf16, #tpu.memory_space<vmem>>, vector<1x8x4xbf16>
    %28 = vector.shape_cast %27 : vector<1x8x4xbf16> to vector<8x4xbf16>
    %cst_20 = arith.constant dense<0.000000e+00> : vector<8x768xf32>
    %29 = tpu.matmul %28, %26, %cst_20 {dimension_numbers = #tpu.dot_dimension_numbers<[1], [0], [0], [1], [0, 0, 1, 1], [], []>} : vector<8x4xbf16>, vector<4x768xbf16>, vector<8x768xf32> -> vector<8x768xf32>
    %30 = arith.addf %25, %29 : vector<8x768xf32>
    %31 = vector.extract_strided_slice %4 {offsets = [0, 129], sizes = [4, 768], strides = [1, 1]} : vector<4x1024xbf16> to vector<4x768xbf16>
    %c5 = arith.constant 5 : index
    %c0_21 = arith.constant 0 : index
    %c0_22 = arith.constant 0 : index
    %32 = vector.load %arg4[%c5, %c0_21, %c0_22] : memref<9x8x4xbf16, #tpu.memory_space<vmem>>, vector<1x8x4xbf16>
    %33 = vector.shape_cast %32 : vector<1x8x4xbf16> to vector<8x4xbf16>
    %cst_23 = arith.constant dense<0.000000e+00> : vector<8x768xf32>
    %34 = tpu.matmul %33, %31, %cst_23 {dimension_numbers = #tpu.dot_dimension_numbers<[1], [0], [0], [1], [0, 0, 1, 1], [], []>} : vector<8x4xbf16>, vector<4x768xbf16>, vector<8x768xf32> -> vector<8x768xf32>
    %35 = arith.addf %30, %34 : vector<8x768xf32>
    %36 = vector.extract_strided_slice %4 {offsets = [0, 145], sizes = [4, 768], strides = [1, 1]} : vector<4x1024xbf16> to vector<4x768xbf16>
    %c6 = arith.constant 6 : index
    %c0_24 = arith.constant 0 : index
    %c0_25 = arith.constant 0 : index
    %37 = vector.load %arg4[%c6, %c0_24, %c0_25] : memref<9x8x4xbf16, #tpu.memory_space<vmem>>, vector<1x8x4xbf16>
    %38 = vector.shape_cast %37 : vector<1x8x4xbf16> to vector<8x4xbf16>
    %cst_26 = arith.constant dense<0.000000e+00> : vector<8x768xf32>
    %39 = tpu.matmul %38, %36, %cst_26 {dimension_numbers = #tpu.dot_dimension_numbers<[1], [0], [0], [1], [0, 0, 1, 1], [], []>} : vector<8x4xbf16>, vector<4x768xbf16>, vector<8x768xf32> -> vector<8x768xf32>
    %40 = arith.addf %35, %39 : vector<8x768xf32>
    %41 = vector.extract_strided_slice %4 {offsets = [0, 146], sizes = [4, 768], strides = [1, 1]} : vector<4x1024xbf16> to vector<4x768xbf16>
    %c7 = arith.constant 7 : index
    %c0_27 = arith.constant 0 : index
    %c0_28 = arith.constant 0 : index
    %42 = vector.load %arg4[%c7, %c0_27, %c0_28] : memref<9x8x4xbf16, #tpu.memory_space<vmem>>, vector<1x8x4xbf16>
    %43 = vector.shape_cast %42 : vector<1x8x4xbf16> to vector<8x4xbf16>
    %cst_29 = arith.constant dense<0.000000e+00> : vector<8x768xf32>
    %44 = tpu.matmul %43, %41, %cst_29 {dimension_numbers = #tpu.dot_dimension_numbers<[1], [0], [0], [1], [0, 0, 1, 1], [], []>} : vector<8x4xbf16>, vector<4x768xbf16>, vector<8x768xf32> -> vector<8x768xf32>
    %45 = arith.addf %40, %44 : vector<8x768xf32>
    %46 = vector.extract_strided_slice %4 {offsets = [0, 147], sizes = [4, 768], strides = [1, 1]} : vector<4x1024xbf16> to vector<4x768xbf16>
    %c8 = arith.constant 8 : index
    %c0_30 = arith.constant 0 : index
    %c0_31 = arith.constant 0 : index
    %47 = vector.load %arg4[%c8, %c0_30, %c0_31] : memref<9x8x4xbf16, #tpu.memory_space<vmem>>, vector<1x8x4xbf16>
    %48 = vector.shape_cast %47 : vector<1x8x4xbf16> to vector<8x4xbf16>
    %cst_32 = arith.constant dense<0.000000e+00> : vector<8x768xf32>
    %49 = tpu.matmul %48, %46, %cst_32 {dimension_numbers = #tpu.dot_dimension_numbers<[1], [0], [0], [1], [0, 0, 1, 1], [], []>} : vector<8x4xbf16>, vector<4x768xbf16>, vector<8x768xf32> -> vector<8x768xf32>
    %50 = arith.addf %45, %49 : vector<8x768xf32>
    %51 = arith.truncf %50 : vector<8x768xf32> to vector<8x768xbf16>
    %c0_33 = arith.constant 0 : index
    %c0_34 = arith.constant 0 : index
    %52 = vector.load %arg6[%c0_33, %c0_34] : memref<8x768xbf16, #tpu.memory_space<vmem>>, vector<8x768xbf16>
    tpu.vector_store %arg6[%c0_33, %c0_34], %51 {strides = array<i32>} : memref<8x768xbf16, #tpu.memory_space<vmem>>, vector<8x768xbf16>,
    %c0_35 = arith.constant 0 : index
    %c0_36 = arith.constant 0 : index
    %53 = vector.load %arg5[%c0_35, %c0_36] : memref<1x768xbf16, #tpu.memory_space<vmem>>, vector<1x768xbf16>
    %54 = arith.extf %53 : vector<1x768xbf16> to vector<1x768xf32>
    %55 = vector.broadcast %54 : vector<1x768xf32> to vector<8x768xf32>
    %56 = arith.mulf %50, %55 : vector<8x768xf32>
    %cst_37 = arith.constant dense<0.000000e+00> : vector<8xf32>
    %57 = vector.multi_reduction <add>, %56, %cst_37 [1] : vector<8x768xf32> to vector<8xf32>
    %58 = vector.shape_cast %57 : vector<8xf32> to vector<8x1xf32>
    %59 = arith.mulf %56, %50 : vector<8x768xf32>
    %cst_38 = arith.constant dense<0.000000e+00> : vector<8xf32>
    %60 = vector.multi_reduction <add>, %59, %cst_38 [1] : vector<8x768xf32> to vector<8xf32>
    %61 = vector.shape_cast %60 : vector<8xf32> to vector<8x1xf32>
    %62 = tpu.concatenate %58, %61 in 1 : vector<8x1xf32>, vector<8x1xf32> -> vector<8x2xf32>
    %c0_39 = arith.constant 0 : index
    %c0_40 = arith.constant 0 : index
    %c0_41 = arith.constant 0 : index
    %63 = vector.load %arg7[%c0_39, %c0_40, %c0_41] : memref<1x8x2xf32, #tpu.memory_space<vmem>>, vector<1x8x2xf32>
    %64 = vector.shape_cast %63 : vector<1x8x2xf32> to vector<8x2xf32>
    %65 = vector.shape_cast %62 : vector<8x2xf32> to vector<1x8x2xf32>
    tpu.vector_store %arg7[%c0_39, %c0_40, %c0_41], %65 {strides = array<i32>} : memref<1x8x2xf32, #tpu.memory_space<vmem>>, vector<1x8x2xf32>,
    return
  }
  func.func @transform_0(%arg0: i32) -> (i32, i32) {
    %c6_i32 = arith.constant 6 : i32
    %0 = arith.muli %arg0, %c6_i32 : i32
    %c1_i32 = arith.constant 1 : i32
    %1 = arith.subi %0, %c1_i32 : i32
    %c0_i32 = arith.constant 0 : i32
    %2 = arith.maxsi %1, %c0_i32 : i32
    %c0_i32_0 = arith.constant 0 : i32
    %c0_i32_1 = arith.constant 0 : i32
    return %c0_i32_0, %2 : i32, i32
  }
  func.func @transform_1(%arg0: i32) -> (i32, i32) {
    %c0_i32 = arith.constant 0 : i32
    %c0_i32_0 = arith.constant 0 : i32
    return %c0_i32, %arg0 : i32, i32
  }
  func.func @transform_2(%arg0: i32) -> (i32, i32) {
    %c1_i32 = arith.constant 1 : i32
    %0 = arith.addi %arg0, %c1_i32 : i32
    %c6_i32 = arith.constant 6 : i32
    %1 = arith.muli %0, %c6_i32 : i32
    %c5_i32 = arith.constant 5 : i32
    %2 = arith.minsi %1, %c5_i32 : i32
    %c0_i32 = arith.constant 0 : i32
    %c0_i32_0 = arith.constant 0 : i32
    return %c0_i32, %2 : i32, i32
  }
  func.func @transform_3(%arg0: i32) -> (i32, i32, i32) {
    %c0_i32 = arith.constant 0 : i32
    %c0_i32_0 = arith.constant 0 : i32
    %c0_i32_1 = arith.constant 0 : i32
    %c0_i32_2 = arith.constant 0 : i32
    return %c0_i32, %c0_i32_0, %c0_i32_1 : i32, i32, i32
  }
  func.func @transform_4(%arg0: i32) -> (i32, i32) {
    %c0_i32 = arith.constant 0 : i32
    %c0_i32_0 = arith.constant 0 : i32
    return %c0_i32, %arg0 : i32, i32
  }
  func.func @transform_5(%arg0: i32) -> (i32, i32) {
    %c0_i32 = arith.constant 0 : i32
    %c0_i32_0 = arith.constant 0 : i32
    return %c0_i32, %arg0 : i32, i32
  }
  func.func @transform_6(%arg0: i32) -> (i32, i32, i32) {
    %c0_i32 = arith.constant 0 : i32
    %c0_i32_0 = arith.constant 0 : i32
    %c0_i32_1 = arith.constant 0 : i32
    return %arg0, %c0_i32, %c0_i32_0 : i32, i32, i32
  }
}

module attributes {stable_mosaic.version = 11 : i64} {
  func.func @_bn_relu_conv2_kernel(%arg0: i32, %arg1: memref<8x128xbf16, #tpu.memory_space<vmem>>, %arg2: memref<8x768xbf16, #tpu.memory_space<vmem>>, %arg3: memref<8x128xbf16, #tpu.memory_space<vmem>>, %arg4: memref<1x128xbf16, #tpu.memory_space<vmem>>, %arg5: memref<1x768xbf16, #tpu.memory_space<vmem>>, %arg6: memref<1x128xbf16, #tpu.memory_space<vmem>>, %arg7: memref<8x1xf32, #tpu.memory_space<vmem>>, %arg8: memref<8x1xf32, #tpu.memory_space<vmem>>, %arg9: memref<9x4x8xbf16, #tpu.memory_space<vmem>>, %arg10: memref<4x768xbf16, #tpu.memory_space<vmem>>, %arg11: memref<1x4x2xf32, #tpu.memory_space<vmem>>) attributes {dimension_semantics = [#tpu.dimension_semantics<parallel>], iteration_bounds = array<i64: 1>, scalar_prefetch = 0 : i64, scratch_operands = 0 : i64, tpu.core_type = #tpu.core_type<tc>, window_params = [{transform_indices = @transform_0, window_bounds = array<i64: 8, 128>}, {transform_indices = @transform_1, window_bounds = array<i64: 8, 768>}, {transform_indices = @transform_2, window_bounds = array<i64: 8, 128>}, {transform_indices = @transform_3, window_bounds = array<i64: 1, 128>}, {transform_indices = @transform_4, window_bounds = array<i64: 1, 768>}, {transform_indices = @transform_5, window_bounds = array<i64: 1, 128>}, {pipeline_mode = #tpu.pipeline_mode<synchronous>, transform_indices = @transform_6, window_bounds = array<i64: 8, 1>}, {pipeline_mode = #tpu.pipeline_mode<synchronous>, transform_indices = @transform_7, window_bounds = array<i64: 8, 1>}, {pipeline_mode = #tpu.pipeline_mode<synchronous>, transform_indices = @transform_8, window_bounds = array<i64: 9, 4, 8>}, {transform_indices = @transform_9, window_bounds = array<i64: 4, 768>}, {transform_indices = @transform_10, window_bounds = array<i64: 1, 4, 2>}]} {
    %c0 = arith.constant 0 : index
    %c0_0 = arith.constant 0 : index
    %0 = vector.load %arg1[%c0, %c0_0] : memref<8x128xbf16, #tpu.memory_space<vmem>>, vector<8x128xbf16>
    %c0_1 = arith.constant 0 : index
    %c0_2 = arith.constant 0 : index
    %1 = vector.load %arg2[%c0_1, %c0_2] : memref<8x768xbf16, #tpu.memory_space<vmem>>, vector<8x768xbf16>
    %c0_3 = arith.constant 0 : index
    %c0_4 = arith.constant 0 : index
    %2 = vector.load %arg3[%c0_3, %c0_4] : memref<8x128xbf16, #tpu.memory_space<vmem>>, vector<8x128xbf16>
    %3 = tpu.concatenate %0, %1, %2 in 1 : vector<8x128xbf16>, vector<8x768xbf16>, vector<8x128xbf16> -> vector<8x1024xbf16>
    %4 = arith.extf %3 : vector<8x1024xbf16> to vector<8x1024xf32>
    %c0_5 = arith.constant 0 : index
    %c0_6 = arith.constant 0 : index
    %5 = vector.load %arg5[%c0_5, %c0_6] : memref<1x768xbf16, #tpu.memory_space<vmem>>, vector<1x768xbf16>
    %6 = arith.extf %5 : vector<1x768xbf16> to vector<1x768xf32>
    %c0_7 = arith.constant 0 : index
    %c0_8 = arith.constant 0 : index
    %7 = vector.load %arg4[%c0_7, %c0_8] : memref<1x128xbf16, #tpu.memory_space<vmem>>, vector<1x128xbf16>
    %8 = arith.extf %7 : vector<1x128xbf16> to vector<1x128xf32>
    %c0_9 = arith.constant 0 : index
    %c0_10 = arith.constant 0 : index
    %9 = vector.load %arg6[%c0_9, %c0_10] : memref<1x128xbf16, #tpu.memory_space<vmem>>, vector<1x128xbf16>
    %10 = arith.extf %9 : vector<1x128xbf16> to vector<1x128xf32>
    %11 = tpu.concatenate %8, %6, %10 in 1 : vector<1x128xf32>, vector<1x768xf32>, vector<1x128xf32> -> vector<1x1024xf32>
    %c0_11 = arith.constant 0 : index
    %c0_12 = arith.constant 0 : index
    %12 = vector.load %arg7[%c0_11, %c0_12] : memref<8x1xf32, #tpu.memory_space<vmem>>, vector<8x1xf32>
    %13 = vector.broadcast %12 : vector<8x1xf32> to vector<8x1024xf32>
    %14 = arith.mulf %4, %13 : vector<8x1024xf32>
    %c0_13 = arith.constant 0 : index
    %c0_14 = arith.constant 0 : index
    %15 = vector.load %arg8[%c0_13, %c0_14] : memref<8x1xf32, #tpu.memory_space<vmem>>, vector<8x1xf32>
    %16 = vector.broadcast %15 : vector<8x1xf32> to vector<8x1024xf32>
    %17 = arith.addf %14, %16 : vector<8x1024xf32>
    %cst = arith.constant 0.000000e+00 : f32
    %18 = vector.broadcast %cst : f32 to vector<8x1024xf32>
    %19 = arith.maximumf %17, %18 : vector<8x1024xf32>
    %20 = vector.broadcast %11 : vector<1x1024xf32> to vector<8x1024xf32>
    %21 = arith.mulf %19, %20 : vector<8x1024xf32>
    %22 = arith.truncf %21 : vector<8x1024xf32> to vector<8x1024xbf16>
    %cst_15 = arith.constant 0.000000e+00 : f32
    %23 = vector.broadcast %cst_15 : f32 to vector<4x768xf32>
    %24 = vector.extract_strided_slice %22 {offsets = [0, 109], sizes = [8, 768], strides = [1, 1]} : vector<8x1024xbf16> to vector<8x768xbf16>
    %c0_16 = arith.constant 0 : index
    %c0_17 = arith.constant 0 : index
    %c0_18 = arith.constant 0 : index
    %25 = vector.load %arg9[%c0_16, %c0_17, %c0_18] : memref<9x4x8xbf16, #tpu.memory_space<vmem>>, vector<1x4x8xbf16>
    %26 = vector.shape_cast %25 : vector<1x4x8xbf16> to vector<4x8xbf16>
    %cst_19 = arith.constant dense<0.000000e+00> : vector<4x768xf32>
    %27 = tpu.matmul %26, %24, %cst_19 {dimension_numbers = #tpu.dot_dimension_numbers<[1], [0], [0], [1], [0, 0, 1, 1], [], []>} : vector<4x8xbf16>, vector<8x768xbf16>, vector<4x768xf32> -> vector<4x768xf32>
    %28 = arith.addf %23, %27 : vector<4x768xf32>
    %29 = vector.extract_strided_slice %22 {offsets = [0, 110], sizes = [8, 768], strides = [1, 1]} : vector<8x1024xbf16> to vector<8x768xbf16>
    %c1 = arith.constant 1 : index
    %c0_20 = arith.constant 0 : index
    %c0_21 = arith.constant 0 : index
    %30 = vector.load %arg9[%c1, %c0_20, %c0_21] : memref<9x4x8xbf16, #tpu.memory_space<vmem>>, vector<1x4x8xbf16>
    %31 = vector.shape_cast %30 : vector<1x4x8xbf16> to vector<4x8xbf16>
    %cst_22 = arith.constant dense<0.000000e+00> : vector<4x768xf32>
    %32 = tpu.matmul %31, %29, %cst_22 {dimension_numbers = #tpu.dot_dimension_numbers<[1], [0], [0], [1], [0, 0, 1, 1], [], []>} : vector<4x8xbf16>, vector<8x768xbf16>, vector<4x768xf32> -> vector<4x768xf32>
    %33 = arith.addf %28, %32 : vector<4x768xf32>
    %34 = vector.extract_strided_slice %22 {offsets = [0, 111], sizes = [8, 768], strides = [1, 1]} : vector<8x1024xbf16> to vector<8x768xbf16>
    %c2 = arith.constant 2 : index
    %c0_23 = arith.constant 0 : index
    %c0_24 = arith.constant 0 : index
    %35 = vector.load %arg9[%c2, %c0_23, %c0_24] : memref<9x4x8xbf16, #tpu.memory_space<vmem>>, vector<1x4x8xbf16>
    %36 = vector.shape_cast %35 : vector<1x4x8xbf16> to vector<4x8xbf16>
    %cst_25 = arith.constant dense<0.000000e+00> : vector<4x768xf32>
    %37 = tpu.matmul %36, %34, %cst_25 {dimension_numbers = #tpu.dot_dimension_numbers<[1], [0], [0], [1], [0, 0, 1, 1], [], []>} : vector<4x8xbf16>, vector<8x768xbf16>, vector<4x768xf32> -> vector<4x768xf32>
    %38 = arith.addf %33, %37 : vector<4x768xf32>
    %39 = vector.extract_strided_slice %22 {offsets = [0, 127], sizes = [8, 768], strides = [1, 1]} : vector<8x1024xbf16> to vector<8x768xbf16>
    %c3 = arith.constant 3 : index
    %c0_26 = arith.constant 0 : index
    %c0_27 = arith.constant 0 : index
    %40 = vector.load %arg9[%c3, %c0_26, %c0_27] : memref<9x4x8xbf16, #tpu.memory_space<vmem>>, vector<1x4x8xbf16>
    %41 = vector.shape_cast %40 : vector<1x4x8xbf16> to vector<4x8xbf16>
    %cst_28 = arith.constant dense<0.000000e+00> : vector<4x768xf32>
    %42 = tpu.matmul %41, %39, %cst_28 {dimension_numbers = #tpu.dot_dimension_numbers<[1], [0], [0], [1], [0, 0, 1, 1], [], []>} : vector<4x8xbf16>, vector<8x768xbf16>, vector<4x768xf32> -> vector<4x768xf32>
    %43 = arith.addf %38, %42 : vector<4x768xf32>
    %44 = vector.extract_strided_slice %22 {offsets = [0, 128], sizes = [8, 768], strides = [1, 1]} : vector<8x1024xbf16> to vector<8x768xbf16>
    %c4 = arith.constant 4 : index
    %c0_29 = arith.constant 0 : index
    %c0_30 = arith.constant 0 : index
    %45 = vector.load %arg9[%c4, %c0_29, %c0_30] : memref<9x4x8xbf16, #tpu.memory_space<vmem>>, vector<1x4x8xbf16>
    %46 = vector.shape_cast %45 : vector<1x4x8xbf16> to vector<4x8xbf16>
    %cst_31 = arith.constant dense<0.000000e+00> : vector<4x768xf32>
    %47 = tpu.matmul %46, %44, %cst_31 {dimension_numbers = #tpu.dot_dimension_numbers<[1], [0], [0], [1], [0, 0, 1, 1], [], []>} : vector<4x8xbf16>, vector<8x768xbf16>, vector<4x768xf32> -> vector<4x768xf32>
    %48 = arith.addf %43, %47 : vector<4x768xf32>
    %49 = vector.extract_strided_slice %22 {offsets = [0, 129], sizes = [8, 768], strides = [1, 1]} : vector<8x1024xbf16> to vector<8x768xbf16>
    %c5 = arith.constant 5 : index
    %c0_32 = arith.constant 0 : index
    %c0_33 = arith.constant 0 : index
    %50 = vector.load %arg9[%c5, %c0_32, %c0_33] : memref<9x4x8xbf16, #tpu.memory_space<vmem>>, vector<1x4x8xbf16>
    %51 = vector.shape_cast %50 : vector<1x4x8xbf16> to vector<4x8xbf16>
    %cst_34 = arith.constant dense<0.000000e+00> : vector<4x768xf32>
    %52 = tpu.matmul %51, %49, %cst_34 {dimension_numbers = #tpu.dot_dimension_numbers<[1], [0], [0], [1], [0, 0, 1, 1], [], []>} : vector<4x8xbf16>, vector<8x768xbf16>, vector<4x768xf32> -> vector<4x768xf32>
    %53 = arith.addf %48, %52 : vector<4x768xf32>
    %54 = vector.extract_strided_slice %22 {offsets = [0, 145], sizes = [8, 768], strides = [1, 1]} : vector<8x1024xbf16> to vector<8x768xbf16>
    %c6 = arith.constant 6 : index
    %c0_35 = arith.constant 0 : index
    %c0_36 = arith.constant 0 : index
    %55 = vector.load %arg9[%c6, %c0_35, %c0_36] : memref<9x4x8xbf16, #tpu.memory_space<vmem>>, vector<1x4x8xbf16>
    %56 = vector.shape_cast %55 : vector<1x4x8xbf16> to vector<4x8xbf16>
    %cst_37 = arith.constant dense<0.000000e+00> : vector<4x768xf32>
    %57 = tpu.matmul %56, %54, %cst_37 {dimension_numbers = #tpu.dot_dimension_numbers<[1], [0], [0], [1], [0, 0, 1, 1], [], []>} : vector<4x8xbf16>, vector<8x768xbf16>, vector<4x768xf32> -> vector<4x768xf32>
    %58 = arith.addf %53, %57 : vector<4x768xf32>
    %59 = vector.extract_strided_slice %22 {offsets = [0, 146], sizes = [8, 768], strides = [1, 1]} : vector<8x1024xbf16> to vector<8x768xbf16>
    %c7 = arith.constant 7 : index
    %c0_38 = arith.constant 0 : index
    %c0_39 = arith.constant 0 : index
    %60 = vector.load %arg9[%c7, %c0_38, %c0_39] : memref<9x4x8xbf16, #tpu.memory_space<vmem>>, vector<1x4x8xbf16>
    %61 = vector.shape_cast %60 : vector<1x4x8xbf16> to vector<4x8xbf16>
    %cst_40 = arith.constant dense<0.000000e+00> : vector<4x768xf32>
    %62 = tpu.matmul %61, %59, %cst_40 {dimension_numbers = #tpu.dot_dimension_numbers<[1], [0], [0], [1], [0, 0, 1, 1], [], []>} : vector<4x8xbf16>, vector<8x768xbf16>, vector<4x768xf32> -> vector<4x768xf32>
    %63 = arith.addf %58, %62 : vector<4x768xf32>
    %64 = vector.extract_strided_slice %22 {offsets = [0, 147], sizes = [8, 768], strides = [1, 1]} : vector<8x1024xbf16> to vector<8x768xbf16>
    %c8 = arith.constant 8 : index
    %c0_41 = arith.constant 0 : index
    %c0_42 = arith.constant 0 : index
    %65 = vector.load %arg9[%c8, %c0_41, %c0_42] : memref<9x4x8xbf16, #tpu.memory_space<vmem>>, vector<1x4x8xbf16>
    %66 = vector.shape_cast %65 : vector<1x4x8xbf16> to vector<4x8xbf16>
    %cst_43 = arith.constant dense<0.000000e+00> : vector<4x768xf32>
    %67 = tpu.matmul %66, %64, %cst_43 {dimension_numbers = #tpu.dot_dimension_numbers<[1], [0], [0], [1], [0, 0, 1, 1], [], []>} : vector<4x8xbf16>, vector<8x768xbf16>, vector<4x768xf32> -> vector<4x768xf32>
    %68 = arith.addf %63, %67 : vector<4x768xf32>
    %69 = arith.truncf %68 : vector<4x768xf32> to vector<4x768xbf16>
    %c0_44 = arith.constant 0 : index
    %c0_45 = arith.constant 0 : index
    %70 = vector.load %arg10[%c0_44, %c0_45] : memref<4x768xbf16, #tpu.memory_space<vmem>>, vector<4x768xbf16>
    tpu.vector_store %arg10[%c0_44, %c0_45], %69 {strides = array<i32>} : memref<4x768xbf16, #tpu.memory_space<vmem>>, vector<4x768xbf16>,
    %71 = vector.broadcast %6 : vector<1x768xf32> to vector<4x768xf32>
    %72 = arith.mulf %68, %71 : vector<4x768xf32>
    %cst_46 = arith.constant dense<0.000000e+00> : vector<4xf32>
    %73 = vector.multi_reduction <add>, %72, %cst_46 [1] : vector<4x768xf32> to vector<4xf32>
    %74 = vector.shape_cast %73 : vector<4xf32> to vector<4x1xf32>
    %75 = arith.mulf %72, %68 : vector<4x768xf32>
    %cst_47 = arith.constant dense<0.000000e+00> : vector<4xf32>
    %76 = vector.multi_reduction <add>, %75, %cst_47 [1] : vector<4x768xf32> to vector<4xf32>
    %77 = vector.shape_cast %76 : vector<4xf32> to vector<4x1xf32>
    %78 = tpu.concatenate %74, %77 in 1 : vector<4x1xf32>, vector<4x1xf32> -> vector<4x2xf32>
    %c0_48 = arith.constant 0 : index
    %c0_49 = arith.constant 0 : index
    %c0_50 = arith.constant 0 : index
    %79 = vector.load %arg11[%c0_48, %c0_49, %c0_50] : memref<1x4x2xf32, #tpu.memory_space<vmem>>, vector<1x4x2xf32>
    %80 = vector.shape_cast %79 : vector<1x4x2xf32> to vector<4x2xf32>
    %81 = vector.shape_cast %78 : vector<4x2xf32> to vector<1x4x2xf32>
    tpu.vector_store %arg11[%c0_48, %c0_49, %c0_50], %81 {strides = array<i32>} : memref<1x4x2xf32, #tpu.memory_space<vmem>>, vector<1x4x2xf32>,
    return
  }
  func.func @transform_0(%arg0: i32) -> (i32, i32) {
    %c6_i32 = arith.constant 6 : i32
    %0 = arith.muli %arg0, %c6_i32 : i32
    %c1_i32 = arith.constant 1 : i32
    %1 = arith.subi %0, %c1_i32 : i32
    %c0_i32 = arith.constant 0 : i32
    %2 = arith.maxsi %1, %c0_i32 : i32
    %c0_i32_0 = arith.constant 0 : i32
    %c0_i32_1 = arith.constant 0 : i32
    return %c0_i32_0, %2 : i32, i32
  }
  func.func @transform_1(%arg0: i32) -> (i32, i32) {
    %c0_i32 = arith.constant 0 : i32
    %c0_i32_0 = arith.constant 0 : i32
    return %c0_i32, %arg0 : i32, i32
  }
  func.func @transform_2(%arg0: i32) -> (i32, i32) {
    %c1_i32 = arith.constant 1 : i32
    %0 = arith.addi %arg0, %c1_i32 : i32
    %c6_i32 = arith.constant 6 : i32
    %1 = arith.muli %0, %c6_i32 : i32
    %c5_i32 = arith.constant 5 : i32
    %2 = arith.minsi %1, %c5_i32 : i32
    %c0_i32 = arith.constant 0 : i32
    %c0_i32_0 = arith.constant 0 : i32
    return %c0_i32, %2 : i32, i32
  }
  func.func @transform_3(%arg0: i32) -> (i32, i32) {
    %c6_i32 = arith.constant 6 : i32
    %0 = arith.muli %arg0, %c6_i32 : i32
    %c1_i32 = arith.constant 1 : i32
    %1 = arith.subi %0, %c1_i32 : i32
    %c0_i32 = arith.constant 0 : i32
    %2 = arith.maxsi %1, %c0_i32 : i32
    %c0_i32_0 = arith.constant 0 : i32
    %c0_i32_1 = arith.constant 0 : i32
    return %c0_i32_0, %2 : i32, i32
  }
  func.func @transform_4(%arg0: i32) -> (i32, i32) {
    %c0_i32 = arith.constant 0 : i32
    %c0_i32_0 = arith.constant 0 : i32
    return %c0_i32, %arg0 : i32, i32
  }
  func.func @transform_5(%arg0: i32) -> (i32, i32) {
    %c1_i32 = arith.constant 1 : i32
    %0 = arith.addi %arg0, %c1_i32 : i32
    %c6_i32 = arith.constant 6 : i32
    %1 = arith.muli %0, %c6_i32 : i32
    %c5_i32 = arith.constant 5 : i32
    %2 = arith.minsi %1, %c5_i32 : i32
    %c0_i32 = arith.constant 0 : i32
    %c0_i32_0 = arith.constant 0 : i32
    return %c0_i32, %2 : i32, i32
  }
  func.func @transform_6(%arg0: i32) -> (i32, i32) {
    %c0_i32 = arith.constant 0 : i32
    %c0_i32_0 = arith.constant 0 : i32
    %c0_i32_1 = arith.constant 0 : i32
    return %c0_i32, %c0_i32_0 : i32, i32
  }
  func.func @transform_7(%arg0: i32) -> (i32, i32) {
    %c0_i32 = arith.constant 0 : i32
    %c0_i32_0 = arith.constant 0 : i32
    %c0_i32_1 = arith.constant 0 : i32
    return %c0_i32, %c0_i32_0 : i32, i32
  }
  func.func @transform_8(%arg0: i32) -> (i32, i32, i32) {
    %c0_i32 = arith.constant 0 : i32
    %c0_i32_0 = arith.constant 0 : i32
    %c0_i32_1 = arith.constant 0 : i32
    %c0_i32_2 = arith.constant 0 : i32
    return %c0_i32, %c0_i32_0, %c0_i32_1 : i32, i32, i32
  }
  func.func @transform_9(%arg0: i32) -> (i32, i32) {
    %c0_i32 = arith.constant 0 : i32
    %c0_i32_0 = arith.constant 0 : i32
    return %c0_i32, %arg0 : i32, i32
  }
  func.func @transform_10(%arg0: i32) -> (i32, i32, i32) {
    %c0_i32 = arith.constant 0 : i32
    %c0_i32_0 = arith.constant 0 : i32
    %c0_i32_1 = arith.constant 0 : i32
    return %arg0, %c0_i32, %c0_i32_0 : i32, i32, i32
  }
}

module attributes {stable_mosaic.version = 11 : i64} {
  func.func @_bn_add_relu_kernel(%arg0: i32, %arg1: memref<4x768xbf16, #tpu.memory_space<vmem>>, %arg2: memref<4x768xf32, #tpu.memory_space<vmem>>, %arg3: memref<4x1xf32, #tpu.memory_space<vmem>>, %arg4: memref<4x1xf32, #tpu.memory_space<vmem>>, %arg5: memref<4x768xf32, #tpu.memory_space<vmem>>) attributes {dimension_semantics = [#tpu.dimension_semantics<parallel>], iteration_bounds = array<i64: 1>, scalar_prefetch = 0 : i64, scratch_operands = 0 : i64, tpu.core_type = #tpu.core_type<tc>, window_params = [{transform_indices = @transform_0, window_bounds = array<i64: 4, 768>}, {transform_indices = @transform_1, window_bounds = array<i64: 4, 768>}, {pipeline_mode = #tpu.pipeline_mode<synchronous>, transform_indices = @transform_2, window_bounds = array<i64: 4, 1>}, {pipeline_mode = #tpu.pipeline_mode<synchronous>, transform_indices = @transform_3, window_bounds = array<i64: 4, 1>}, {transform_indices = @transform_4, window_bounds = array<i64: 4, 768>}]} {
    %c0 = arith.constant 0 : index
    %c0_0 = arith.constant 0 : index
    %0 = vector.load %arg1[%c0, %c0_0] : memref<4x768xbf16, #tpu.memory_space<vmem>>, vector<4x768xbf16>
    %1 = arith.extf %0 : vector<4x768xbf16> to vector<4x768xf32>
    %c0_1 = arith.constant 0 : index
    %c0_2 = arith.constant 0 : index
    %2 = vector.load %arg3[%c0_1, %c0_2] : memref<4x1xf32, #tpu.memory_space<vmem>>, vector<4x1xf32>
    %3 = vector.broadcast %2 : vector<4x1xf32> to vector<4x768xf32>
    %4 = arith.mulf %1, %3 : vector<4x768xf32>
    %c0_3 = arith.constant 0 : index
    %c0_4 = arith.constant 0 : index
    %5 = vector.load %arg4[%c0_3, %c0_4] : memref<4x1xf32, #tpu.memory_space<vmem>>, vector<4x1xf32>
    %6 = vector.broadcast %5 : vector<4x1xf32> to vector<4x768xf32>
    %7 = arith.addf %4, %6 : vector<4x768xf32>
    %c0_5 = arith.constant 0 : index
    %c0_6 = arith.constant 0 : index
    %8 = vector.load %arg2[%c0_5, %c0_6] : memref<4x768xf32, #tpu.memory_space<vmem>>, vector<4x768xf32>
    %9 = arith.addf %7, %8 : vector<4x768xf32>
    %cst = arith.constant 0.000000e+00 : f32
    %10 = vector.broadcast %cst : f32 to vector<4x768xf32>
    %11 = arith.maximumf %9, %10 : vector<4x768xf32>
    %c0_7 = arith.constant 0 : index
    %c0_8 = arith.constant 0 : index
    %12 = vector.load %arg5[%c0_7, %c0_8] : memref<4x768xf32, #tpu.memory_space<vmem>>, vector<4x768xf32>
    tpu.vector_store %arg5[%c0_7, %c0_8], %11 {strides = array<i32>} : memref<4x768xf32, #tpu.memory_space<vmem>>, vector<4x768xf32>,
    return
  }
  func.func @transform_0(%arg0: i32) -> (i32, i32) {
    %c0_i32 = arith.constant 0 : i32
    %c0_i32_0 = arith.constant 0 : i32
    return %c0_i32, %arg0 : i32, i32
  }
  func.func @transform_1(%arg0: i32) -> (i32, i32) {
    %c0_i32 = arith.constant 0 : i32
    %c0_i32_0 = arith.constant 0 : i32
    return %c0_i32, %arg0 : i32, i32
  }
  func.func @transform_2(%arg0: i32) -> (i32, i32) {
    %c0_i32 = arith.constant 0 : i32
    %c0_i32_0 = arith.constant 0 : i32
    %c0_i32_1 = arith.constant 0 : i32
    return %c0_i32, %c0_i32_0 : i32, i32
  }
  func.func @transform_3(%arg0: i32) -> (i32, i32) {
    %c0_i32 = arith.constant 0 : i32
    %c0_i32_0 = arith.constant 0 : i32
    %c0_i32_1 = arith.constant 0 : i32
    return %c0_i32, %c0_i32_0 : i32, i32
  }
  func.func @transform_4(%arg0: i32) -> (i32, i32) {
    %c0_i32 = arith.constant 0 : i32
    %c0_i32_0 = arith.constant 0 : i32
    return %c0_i32, %arg0 : i32, i32
  }
}

</mosaic_0001>

<bundles_post_ra>
// kernel: pruned_building_block_forward.5
= control target key start
LH: loop header
LB: loop body
LE: loop exit
PB: predicated region body
PF: predicated region fallthrough
CT: control target
= control target key end

     0   :  { %v73_v0 = vmov 0   ;;  %v74_v3 = vmov 839922192   ;;  %v30_v5 = vlaneseq  ;;  %s130_s2 = inlined_call_operand.vmem [shape: f32[4,1], index: 2, kind: input, shape index: {}]   ;;  %s131_s3 = inlined_call_operand.vmem [shape: f32[4,1], index: 3, kind: input, shape index: {}]   ;;  %s132_s0 = inlined_call_operand.vmem [shape: bf16[4,768], index: 0, kind: input, shape index: {}]   ;;  %s133_s1 = inlined_call_operand.vmem [shape: f32[4,768], index: 1, kind: input, shape index: {}]   ;;  %s134_s4 = inlined_call_operand.vmem [shape: f32[4,768], index: 4, kind: output, shape index: {}]  }
   0x1   :  { %72 = vset.pattern.permute.xlu0 %v73_v0  ;;  %v22_v1 = vld [vmem:[%s130_s2] sm:$0xf]  ;;  %v28_v4 = vunpack.c.l.s4 %v74_v3  ;;  %v18_v10 = vld [vmem:[%s132_s0 + $0x8] sm:$0xf]  ;;  %v56_v23 = vld [vmem:[%s133_s1 + $0x10] sm:$0xff] }
   0x2   :  { %25 = vperm.xlu0 %72, %v22_v1   ;;  %v38_v2 = vld [vmem:[%s131_s3] sm:$0xf]  ;;  %v31_v7 = vshrl.u32 %v30_v5, 7  ;;  %v21_v14 = vunpack.c.l.bf16 %v18_v10  ;;  %v55_v22 = vld [vmem:[%s133_s1 + $0x8] sm:$0xff] }
   0x3   :  { %v29_v6 = vunpack.c.0.s8 %v28_v4  ;;  %v17_v9 = vld [vmem:[%s132_s0] sm:$0xff] }
   0x4   :  { %v19_v12 = vunpack.c.l.bf16 %v17_v9  ;;  %v20_v13 = vunpack.c.h.bf16 %v17_v9  ;;  %v54_v21 = vld [vmem:[%s133_s1] sm:$0xff] }
   0x5   :  { %v32_v8 = vsub.s32 %v29_v6, %v31_v7 }
   0x6   :  { %41 = vperm.xlu0 %72, %v38_v2  }
  0x81   :  { %v26_v11 = vpop.permute.xlu0 %25 }
  0x82   :  { %v33_v15 = vrot.slane %v26_v11, %v32_v8 }
  0x84   :  { %v35_v17 = vmul.f32 %v33_v15, %v19_v12  ;;  %v36_v18 = vmul.f32 %v33_v15, %v20_v13  ;;  %v37_v19 = vmul.f32 %v33_v15, %v21_v14 }
  0x85   :  { %v42_v16 = vpop.permute.xlu0 %41 }
  0x86   :  { %v49_v20 = vrot.slane %v42_v16, %v32_v8 }
  0x88   :  { %v51_v24 = vadd.f32 %v49_v20, %v35_v17  ;;  %v52_v25 = vadd.f32 %v49_v20, %v36_v18  ;;  %v53_v26 = vadd.f32 %v49_v20, %v37_v19 }
  0x8a   :  { %v57_v27 = vadd.f32 %v54_v21, %v51_v24  ;;  %v58_v28 = vadd.f32 %v55_v22, %v52_v25  ;;  %v59_v29 = vadd.f32 %v56_v23, %v53_v26 }
  0x8c   :  { %v60_v30 = vmax.f32 %v57_v27, 0.0  ;;  %v61_v31 = vmax.f32 %v58_v28, 0.0  ;;  %v62_v32 = vmax.f32 %v59_v29, 0.0 }
  0x8e   :  { %63 = vst [vmem:[%s134_s4] sm:$0xff] %v60_v30  ;;  %64 = vst [vmem:[%s134_s4 + $0x8] sm:$0xff] %v61_v31 }
  0x8f   :  { %65 = vst [vmem:[%s134_s4 + $0x10] sm:$0xff] %v62_v32 }

// kernel: pruned_building_block_forward.3
= control target key start
LH: loop header
LB: loop body
LE: loop exit
PB: predicated region body
PF: predicated region fallthrough
CT: control target
= control target key end

     0   :  { %v1951_v3 = vmov 0   ;;  %s1952_s27 = smov 18   ;;  %s1953_s29 = smov 17   ;;  %vm133_vm0 = vcmask 146432   ;;  %vm144_vm1 = vcmask 1041408   ;;  %vm140_vm2 = vcmask 31744   ;;  %s2288_s1 = inlined_call_operand.vmem [shape: f32[4,768], index: 1, kind: input, shape index: {}, may-alias: {0,1,2}]   ;;  %s2289_s0 = inlined_call_operand.vmem [shape: f32[4,768], index: 0, kind: input, shape index: {}, may-alias: {0,1,2}]   ;;  %s2290_s2 = inlined_call_operand.vmem [shape: f32[4,768], index: 2, kind: input, shape index: {}, may-alias: {0,1,2}]   ;;  %s2291_s3 = inlined_call_operand.vmem [shape: bf16[9,8,4], index: 3, kind: input, shape index: {}]   ;;  %s2292_s4 = inlined_call_operand.vmem [shape: bf16[1,768], index: 4, kind: input, shape index: {}]   ;;  %s2293_s5 = inlined_call_operand.vmem [shape: bf16[8,768], index: 5, kind: output, shape index: {0}]   ;;  %s2294_s6 = inlined_call_operand.vmem [shape: f32[1,8,2], index: 6, kind: output, shape index: {1}]  }
   0x1   :  { %v89_v0 = vld [vmem:[%s2288_s1 + $0x8] sm:$0xff]  ;;  %v87_v1 = vld [vmem:[%s2289_s0] sm:$0xf]  ;;  %195 = vmatprep.mubr.bf16.mxu1 %v1951_v3  ;;  %527 = vmatprep.mubr.bf16.mxu0 %v1951_v3  ;;  %v90_v10 = vld [vmem:[%s2288_s1 + $0x10] sm:$0xff]  ;;  %s1955_s30 = smov 1   ;;  %s1956_s7 = smov 127  }
   0x2   :  { %v88_v2 = vld [vmem:[%s2288_s1] sm:$0xff]  ;;  %v2006_v4 = vpack.c.bf16 %v89_v0, %v89_v0  ;;  %v101_v5 = vpack.c.bf16 %v87_v1, %v87_v1  ;;  %v96_v9 = vcombine.high %v89_v0, %v89_v0  ;;  %v2018_v11 = vpack.c.bf16 %v90_v10, %v90_v10  ;;  %s1954_s1 = smov 19   ;;  %v1778_v15 = vld [vmem:[%s2290_s2 + $0x14] sm:$0xf]  ;;  %s1957_s10 = smov 111  }
   0x3   :  { %v95_v6 = vcombine.high %v88_v2, %v88_v2  ;;  %v2011_v8 = vpack.c.bf16 %v88_v2, %v88_v2  ;;  %v97_v13 = vcombine.high %v90_v10, %v90_v10  ;;  %v108_v16 = vpack.c.bf16 %v1778_v15, %v1778_v15  ;;  %s1958_s2 = smov 110   ;;  %s1959_s11 = smov 109   ;;  %v1779_v25 = vld [vmem:[%s2291_s3 + $0x4] sm:$0xf]  ;;  %v2100_v40 = vld [vmem:[%s2291_s3 + $0x8] sm:$0xf] }
   0x4   :  { %125 = vrot.lane.b32.xlu1 %v2006_v4, %s1952_s27  ;;  %119 = vrot.lane.b32.xlu0 %v101_v5, %s1952_s27  ;;  %v2020_v12 = vpack.c.bf16 %v96_v9, %v96_v9  ;;  %vm467_vm3 = vcmask 138240   ;;  %vm300_vm4 = vcmask 154624   ;;  %v109_v53 = vld [vmem:[%s2291_s3] sm:$0xf]  ;;  %vm640_vm5 = vcmask 7168  }
   0x5   :  { %v2009_v7 = vpack.c.bf16 %v95_v6, %v95_v6  ;;  %v2024_v14 = vpack.c.bf16 %v97_v13, %v97_v13  ;;  %vm966_vm6 = vcmask 1039360   ;;  %vm1139_vm7 = vcmask 908288  }
   0x6   :  { %vm1312_vm8 = vcmask 900096   ;;  %vm1485_vm9 = vcmask 891904   ;;  %vm1756_vm10 = vcmask 15360  }
   0x8   :  { %123 = vrot.lane.b32.xlu1 %v2009_v7, %s1952_s27  ;;  %121 = vrot.lane.b32.xlu0 %v2011_v8, %s1952_s27 }
   0xc   :  { %129 = vrot.lane.b32.xlu1 %v2018_v11, %s1952_s27  ;;  %127 = vrot.lane.b32.xlu0 %v2020_v12, %s1952_s27 }
  0x10   :  { %453 = vrot.lane.b32.xlu1 %v101_v5, %s1953_s29  ;;  %131 = vrot.lane.b32.xlu0 %v2024_v14, %s1952_s27 }
  0x14   :  { %457 = vrot.lane.b32.xlu1 %v2009_v7, %s1953_s29  ;;  %455 = vrot.lane.b32.xlu0 %v2011_v8, %s1953_s29 }
  0x18   :  { %288 = vrot.lane.b32.xlu1 %v2011_v8, %s1954_s1  ;;  %286 = vrot.lane.b32.xlu0 %v101_v5, %s1954_s1 }
  0x1c   :  { %461 = vrot.lane.b32.xlu1 %v2020_v12, %s1953_s29  ;;  %290 = vrot.lane.b32.xlu0 %v2009_v7, %s1954_s1 }
  0x20   :  { %465 = vrot.lane.b32.xlu1 %v2024_v14, %s1953_s29  ;;  %463 = vrot.lane.b32.xlu0 %v2018_v11, %s1953_s29 }
  0x24   :  { %294 = vrot.lane.b32.xlu1 %v2020_v12, %s1954_s1  ;;  %292 = vrot.lane.b32.xlu0 %v2006_v4, %s1954_s1 }
  0x28   :  { %628 = vrot.lane.b32.xlu1 %v2011_v8, %s1955_s30  ;;  %626 = vrot.lane.b32.xlu0 %v101_v5, %s1955_s30  ;;  %v1799_v5 = vld [vmem:[%s2291_s3 + $0xc] sm:$0xf] }
  0x2c   :  { %296 = vrot.lane.b32.xlu1 %v2018_v11, %s1954_s1  ;;  %630 = vrot.lane.b32.xlu0 %v2009_v7, %s1955_s30 }
  0x30   :  { %634 = vrot.lane.b32.xlu1 %v2020_v12, %s1955_s30  ;;  %298 = vrot.lane.b32.xlu0 %v2024_v14, %s1954_s1 }
  0x34   :  { %638 = vrot.lane.b32.xlu1 %v2024_v14, %s1955_s30  ;;  %636 = vrot.lane.b32.xlu0 %v2018_v11, %s1955_s30 }
  0x38   :  { %632 = vrot.lane.b32.xlu1 %v2006_v4, %s1955_s30  ;;  %459 = vrot.lane.b32.xlu0 %v2006_v4, %s1953_s29 }
  0x3c   :  { %954 = vrot.lane.b32.xlu1 %v2009_v7, %s1956_s7  ;;  %952 = vrot.lane.b32.xlu0 %v2011_v8, %s1956_s7 }
  0x40   :  { %960 = vrot.lane.b32.xlu1 %v2018_v11, %s1956_s7  ;;  %956 = vrot.lane.b32.xlu0 %v2006_v4, %s1956_s7 }
  0x44   :  { %964 = vrot.lane.b32.xlu1 %v108_v16, %s1956_s7  ;;  %962 = vrot.lane.b32.xlu0 %v2024_v14, %s1956_s7 }
  0x48   :  { %1127 = vrot.lane.b32.xlu1 %v2009_v7, %s1957_s10  ;;  %1125 = vrot.lane.b32.xlu0 %v2011_v8, %s1957_s10 }
  0x4c   :  { %958 = vrot.lane.b32.xlu1 %v2020_v12, %s1956_s7  ;;  %1129 = vrot.lane.b32.xlu0 %v2006_v4, %s1957_s10 }
  0x50   :  { %1135 = vrot.lane.b32.xlu1 %v2024_v14, %s1957_s10  ;;  %1133 = vrot.lane.b32.xlu0 %v2018_v11, %s1957_s10 }
  0x54   :  { %1131 = vrot.lane.b32.xlu1 %v2020_v12, %s1957_s10  ;;  %1137 = vrot.lane.b32.xlu0 %v108_v16, %s1957_s10 }
  0x58   :  { %1298 = vrot.lane.b32.xlu0 %v2011_v8, %s1958_s2  ;;  %1300 = vrot.lane.b32.xlu1 %v2009_v7, %s1958_s2 }
  0x5c   :  { %1302 = vrot.lane.b32.xlu0 %v2006_v4, %s1958_s2  ;;  %1306 = vrot.lane.b32.xlu1 %v2018_v11, %s1958_s2 }
  0x60   :  { %1308 = vrot.lane.b32.xlu0 %v2024_v14, %s1958_s2  ;;  %1310 = vrot.lane.b32.xlu1 %v108_v16, %s1958_s2 }
  0x64   :  { %1304 = vrot.lane.b32.xlu0 %v2020_v12, %s1958_s2  ;;  %1471 = vrot.lane.b32.xlu1 %v2011_v8, %s1959_s11 }
  0x68   :  { %1475 = vrot.lane.b32.xlu1 %v2006_v4, %s1959_s11  ;;  %1473 = vrot.lane.b32.xlu0 %v2009_v7, %s1959_s11 }
  0x6c   :  { %1479 = vrot.lane.b32.xlu1 %v2018_v11, %s1959_s11  ;;  %1477 = vrot.lane.b32.xlu0 %v2020_v12, %s1959_s11 }
  0x70   :  { %1481 = vrot.lane.b32.xlu0 %v2024_v14, %s1959_s11  ;;  %1483 = vrot.lane.b32.xlu1 %v108_v16, %s1959_s11 }
  0x76   :  { %v126_v17 = vpop.permute.xlu1 %125  ;;  %v120_v18 = vpop.permute.xlu0 %119 }
  0x7a   :  { %v124_v19 = vpop.permute.xlu1 %123  ;;  %v122_v20 = vpop.permute.xlu0 %121 }
  0x7b   :  { %v135_v21 = vsel %vm133_vm0, %v122_v20, %v124_v19  ;;  %v134_v22 = vsel %vm133_vm0, %v120_v18, %v122_v20  ;;  %v136_v24 = vsel %vm133_vm0, %v124_v19, %v126_v17 }
  0x7c   :  { %1780 = vmatprep.subr.msk.bf16.mxu1 %vm144_vm1, %v135_v21  ;;  %v146_v23 = vsel %vm144_vm1, %v134_v22, 0  ;;  %v152_v29 = vsel %vm144_vm1, %v136_v24, 0  ;;  %v803_v22 = vsel %vm144_vm1, %v2011_v8, 0 }
  0x7d   :  { %164 = vmatpush1.bf16.msra.mxu1 %v146_v23 }
  0x7e   :  { %v130_v26 = vpop.permute.xlu1 %129  ;;  %v128_v27 = vpop.permute.xlu0 %127 }
  0x7f   :  { %v137_v28 = vsel %vm133_vm0, %v126_v17, %v128_v27  ;;  %v138_v33 = vsel %vm133_vm0, %v128_v27, %v130_v26 }
  0x80   :  { %1781 = vmatmul.mubr.msk.bf16.vlgmr.msra.gmra.mrb[0].mxu1 %vm140_vm2, %v1779_v25  ;;  %1782 = vmatprep.subr.msk.bf16.mxu1 %vm144_vm1, %v137_v28  ;;  %v158_v38 = vsel %vm144_vm1, %v138_v33, 0 }
  0x81   :  { %205 = vmatpush1.bf16.msra.mxu1 %v152_v29  ;;  %236 = vmatprep.mubr.bf16.mxu1 %v1951_v3  ;;  %v1806_v29 = vld [vmem:[%s2291_s3 + $0x10] sm:$0xf] }
  0x82   :  { %v454_v30 = vpop.permute.xlu1 %453  ;;  %v132_v31 = vpop.permute.xlu0 %131 }
  0x83   :  { %v139_v32 = vsel %vm133_vm0, %v130_v26, %v132_v31 }
  0x84   :  { %1784 = vmatprep.subr.msk.bf16.mxu1 %vm144_vm1, %v139_v32  ;;  %v815_v32 = vsel %vm144_vm1, %v2018_v11, 0 }
  0x86   :  { %v2088_v34 = vpop.permute.xlu1 %457  ;;  %v456_v35 = vpop.permute.xlu0 %455 }
  0x87   :  { %v469_v36 = vsel %vm467_vm3, %v456_v35, %v2088_v34  ;;  %v468_v37 = vsel %vm467_vm3, %v454_v30, %v456_v35 }
  0x88   :  { %1783 = vmatmul.mubr.msk.bf16.vlgmr.msra.gmra.mrb[4].mxu1 %vm140_vm2, %v1779_v25  ;;  %1793 = vmatprep.subr.msk.bf16.mxu0 %vm144_vm1, %v469_v36  ;;  %v478_v39 = vsel %vm144_vm1, %v468_v37, 0 }
  0x89   :  { %246 = vmatpush1.bf16.msra.mxu1 %v158_v38  ;;  %496 = vmatpush1.bf16.msra.mxu0 %v478_v39 }
  0x8a   :  { %v289_v41 = vpop.permute.xlu1 %288  ;;  %v287_v42 = vpop.permute.xlu0 %286  ;;  %277 = vmatprep.mubr.bf16.mxu1 %v1951_v3 }
  0x8b   :  { %v301_v43 = vsel %vm300_vm4, %v287_v42, %v289_v41 }
  0x8c   :  { %1794 = vmatmul.mubr.msk.bf16.vlgmr.msra.gmra.mrb[0].mxu0 %vm140_vm2, %v2100_v40  ;;  %v311_v47 = vsel %vm144_vm1, %v301_v43, 0 }
  0x8d   :  { %609 = vmatprep.mubr.bf16.mxu0 %v1951_v3 }
  0x8e   :  { %v2107_v44 = vpop.permute.xlu1 %461  ;;  %v291_v45 = vpop.permute.xlu0 %290 }
  0x8f   :  { %v302_v46 = vsel %vm300_vm4, %v289_v41, %v291_v45 }
  0x90   :  { %1785 = vmatmul.mubr.msk.bf16.vlgmr.msra.gmra.mrb[8].mxu1 %vm140_vm2, %v1779_v25  ;;  %1786 = vmatprep.subr.msk.bf16.mxu1 %vm144_vm1, %v302_v46 }
  0x91   :  { %329 = vmatpush1.bf16.msra.mxu1 %v311_v47  ;;  %360 = vmatprep.mubr.bf16.mxu1 %v1951_v3 }
  0x92   :  { %v466_v48 = vpop.permute.xlu1 %465  ;;  %v464_v49 = vpop.permute.xlu0 %463 }
  0x93   :  { %v472_v50 = vsel %vm467_vm3, %v2107_v44, %v464_v49  ;;  %v473_v51 = vsel %vm467_vm3, %v464_v49, %v466_v48 }
  0x94   :  { %v490_v52 = vsel %vm144_vm1, %v472_v50, 0  ;;  %1797 = vmatprep.subr.msk.bf16.mxu0 %vm144_vm1, %v473_v51 }
  0x95   :  { %578 = vmatpush1.bf16.msra.mxu0 %v490_v52 }
  0x96   :  { %v295_v54 = vpop.permute.xlu1 %294  ;;  %v293_v55 = vpop.permute.xlu0 %292 }
  0x97   :  { %v303_v56 = vsel %vm300_vm4, %v291_v45, %v293_v55  ;;  %v304_v57 = vsel %vm300_vm4, %v293_v55, %v295_v54 }
  0x98   :  { %v317_v58 = vsel %vm144_vm1, %v303_v56, 0  ;;  %1787 = vmatmul.mubr.msk.bf16.vlgmr.msra.gmra.mrb[0].mxu1 %vm140_vm2, %v109_v53  ;;  %1788 = vmatprep.subr.msk.bf16.mxu1 %vm144_vm1, %v304_v57 }
  0x99   :  { %370 = vmatpush1.bf16.msra.mxu1 %v317_v58  ;;  %1798 = vmatmul.mubr.msk.bf16.vlgmr.msra.gmra.mrb[4].mxu0 %vm140_vm2, %v2100_v40 }
  0x9a   :  { %v629_v59 = vpop.permute.xlu1 %628  ;;  %v627_v60 = vpop.permute.xlu0 %626  ;;  %401 = vmatprep.mubr.bf16.mxu1 %v1951_v3  ;;  %700 = vmatprep.mubr.bf16.mxu0 %v1951_v3 }
  0x9b   :  { %v641_v61 = vsel %vm640_vm5, %v627_v60, %v629_v59 }
  0x9c   :  { %v651_v1 = vsel %vm144_vm1, %v641_v61, 0  ;;  %v1820_v61 = vld [vmem:[%s2291_s3 + $0x18] sm:$0xf] }
  0x9e   :  { %v297_v62 = vpop.permute.xlu1 %296  ;;  %v631_v63 = vpop.permute.xlu0 %630 }
  0x9f   :  { %v642_v0 = vsel %vm640_vm5, %v629_v59, %v631_v63  ;;  %v305_v2 = vsel %vm300_vm4, %v295_v54, %v297_v62 }
  0xa0   :  { %1789 = vmatmul.mubr.msk.bf16.vlgmr.msra.gmra.mrb[4].mxu1 %vm140_vm2, %v109_v53  ;;  %1800 = vmatprep.subr.msk.bf16.mxu0 %vm144_vm1, %v642_v0  ;;  %v323_v13 = vsel %vm144_vm1, %v305_v2, 0 }
  0xa1   :  { %669 = vmatpush1.bf16.msra.mxu0 %v651_v1  ;;  %442 = vmatprep.mubr.bf16.mxu1 %v1951_v3 }
  0xa2   :  { %v635_v6 = vpop.permute.xlu1 %634  ;;  %v299_v9 = vpop.permute.xlu0 %298 }
  0xa3   :  { %v306_v10 = vsel %vm300_vm4, %v297_v62, %v299_v9 }
  0xa4   :  { %1790 = vmatprep.subr.msk.bf16.mxu1 %vm144_vm1, %v306_v10  ;;  %1801 = vmatmul.mubr.msk.bf16.vlgmr.msra.gmra.mrb[0].mxu0 %vm140_vm2, %v1799_v5 }
  0xa5   :  { %411 = vmatpush1.bf16.msra.mxu1 %v323_v13  ;;  %782 = vmatprep.mubr.bf16.mxu0 %v1951_v3 }
  0xa6   :  { %v639_v15 = vpop.permute.xlu1 %638  ;;  %v637_v16 = vpop.permute.xlu0 %636 }
  0xa7   :  { %v645_v17 = vsel %vm640_vm5, %v635_v6, %v637_v16  ;;  %v646_v18 = vsel %vm640_vm5, %v637_v16, %v639_v15 }
  0xa8   :  { %v663_v19 = vsel %vm144_vm1, %v645_v17, 0  ;;  %1791 = vmatmul.mubr.msk.bf16.vlgmr.msra.gmra.mrb[8].mxu1 %vm140_vm2, %v109_v53  ;;  %1804 = vmatprep.subr.msk.bf16.mxu0 %vm144_vm1, %v646_v18 }
  0xa9   :  { %751 = vmatpush1.bf16.msra.mxu0 %v663_v19  ;;  %568 = vmatprep.mubr.bf16.mxu1 %v1951_v3 }
  0xaa   :  { %v633_v20 = vpop.permute.xlu1 %632  ;;  %v460_v21 = vpop.permute.xlu0 %459  ;;  %1807 = vmatprep.subr.msk.bf16.mxu0 %vm144_vm1, %v2009_v7 }
  0xab   :  { %v470_v23 = vsel %vm467_vm3, %v2088_v34, %v460_v21  ;;  %v471_v24 = vsel %vm467_vm3, %v460_v21, %v2107_v44  ;;  %v643_v26 = vsel %vm640_vm5, %v631_v63, %v633_v20  ;;  %v644_v27 = vsel %vm640_vm5, %v633_v20, %v635_v6 }
  0xac   :  { %v484_v25 = vsel %vm144_vm1, %v470_v23, 0  ;;  %1795 = vmatprep.subr.msk.bf16.mxu1 %vm144_vm1, %v471_v24  ;;  %1805 = vmatmul.mubr.msk.bf16.vlgmr.msra.gmra.mrb[4].mxu0 %vm140_vm2, %v1799_v5  ;;  %v657_v28 = vsel %vm144_vm1, %v643_v26, 0  ;;  %v1827_v24 = vld [vmem:[%s2291_s3 + $0x1c] sm:$0xf] }
  0xad   :  { %537 = vmatpush1.bf16.msra.mxu1 %v484_v25  ;;  %821 = vmatpush1.bf16.msra.mxu0 %v803_v22 }
  0xae   :  { %v955_v7 = vpop.permute.xlu1 %954  ;;  %1802 = vmatprep.subr.msk.bf16.mxu1 %vm144_vm1, %v644_v27  ;;  %852 = vmatprep.mubr.bf16.mxu0 %v1951_v3  ;;  %v953_v8 = vpop.permute.xlu0 %952 }
  0xaf   :  { %1811 = vmatprep.subr.msk.bf16.mxu0 %vm144_vm1, %v2024_v14  ;;  %v967_v35 = vsel %vm966_vm6, %v953_v8, %v955_v7 }
  0xb0   :  { %1796 = vmatmul.mubr.msk.bf16.vlgmr.msra.gmra.mrb[4].mxu1 %vm140_vm2, %v2100_v40  ;;  %v977_v36 = vsel %vm144_vm1, %v967_v35, 0 }
  0xb1   :  { %710 = vmatpush1.bf16.msra.mxu1 %v657_v28  ;;  %741 = vmatprep.mubr.bf16.mxu1 %v1951_v3 }
  0xb2   :  { %v961_v30 = vpop.permute.xlu1 %960  ;;  %v957_v31 = vpop.permute.xlu0 %956  ;;  %1809 = vmatprep.subr.msk.bf16.mxu1 %vm144_vm1, %v2020_v12  ;;  %v809_v12 = vsel %vm144_vm1, %v2006_v4, 0  ;;  %v1813_v4 = vld [vmem:[%s2291_s3 + $0x14] sm:$0xf] }
  0xb3   :  { %v968_v14 = vsel %vm966_vm6, %v955_v7, %v957_v31 }
  0xb4   :  { %1808 = vmatmul.mubr.msk.bf16.vlgmr.msra.gmra.mrb[0].mxu0 %vm140_vm2, %v1806_v29 }
  0xb5   :  { %903 = vmatpush1.bf16.msra.mxu0 %v815_v32  ;;  %934 = vmatprep.mubr.bf16.mxu0 %v1951_v3 }
  0xb6   :  { %v965_v33 = vpop.permute.xlu1 %964  ;;  %1814 = vmatprep.subr.msk.bf16.mxu0 %vm144_vm1, %v968_v14  ;;  %v963_v34 = vpop.permute.xlu0 %962  ;;  %v1834_v14 = vld [vmem:[%s2291_s3 + $0x20] sm:$0xf] }
  0xb7   :  { %v972_v38 = vsel %vm966_vm6, %v963_v34, %v965_v33  ;;  %v971_v41 = vsel %vm966_vm6, %v961_v30, %v963_v34 }
  0xb8   :  { %v989_v43 = vsel %vm144_vm1, %v971_v41, 0 }
  0xba   :  { %v1128_v37 = vpop.permute.xlu1 %1127  ;;  %v1126_v11 = vpop.permute.xlu0 %1125 }
  0xbb   :  { %v1140_v50 = vsel %vm1139_vm7, %v1126_v11, %v1128_v37 }
  0xbc   :  { %1803 = vmatmul.mubr.msk.bf16.vlgmr.msra.gmra.mrb[4].mxu1 %vm140_vm2, %v1799_v5  ;;  %1812 = vmatmul.mubr.msk.bf16.vlgmr.msra.gmra.mrb[4].mxu0 %vm140_vm2, %v1806_v29  ;;  %v1150_v53 = vsel %vm144_vm1, %v1140_v50, 0 }
  0xbd   :  { %995 = vmatpush1.bf16.msra.mxu0 %v977_v36  ;;  %862 = vmatpush1.bf16.msra.mxu1 %v809_v12 }
  0xbe   :  { %v959_v39 = vpop.permute.xlu1 %958  ;;  %1026 = vmatprep.mubr.bf16.mxu0 %v1951_v3  ;;  %1818 = vmatprep.subr.msk.bf16.mxu0 %vm144_vm1, %v972_v38  ;;  %v1130_v40 = vpop.permute.xlu0 %1129 }
  0xbf   :  { %v970_v42 = vsel %vm966_vm6, %v959_v39, %v961_v30  ;;  %893 = vmatprep.mubr.bf16.mxu1 %v1951_v3  ;;  %v1141_v46 = vsel %vm1139_vm7, %v1128_v37, %v1130_v40  ;;  %v969_v47 = vsel %vm966_vm6, %v957_v31, %v959_v39 }
  0xc0   :  { %1816 = vmatprep.subr.msk.bf16.mxu1 %vm144_vm1, %v970_v42  ;;  %v983_v52 = vsel %vm144_vm1, %v969_v47, 0  ;;  %v1669_v42 = vld [vmem:[%s2292_s4] sm:$0x3f] }
  0xc2   :  { %v1136_v44 = vpop.permute.xlu1 %1135  ;;  %v1134_v45 = vpop.permute.xlu0 %1133 }
  0xc3   :  { %v1144_v59 = vsel %vm1139_vm7, %v1134_v45, %v1136_v44 }
  0xc4   :  { %1815 = vmatmul.mubr.msk.bf16.vlgmr.msra.gmra.mrb[0].mxu0 %vm140_vm2, %v1813_v4  ;;  %v1162_v62 = vsel %vm144_vm1, %v1144_v59, 0 }
  0xc5   :  { %1077 = vmatpush1.bf16.msra.mxu0 %v989_v43  ;;  %1108 = vmatprep.mubr.bf16.mxu0 %v1951_v3 }
  0xc6   :  { %1821 = vmatprep.subr.msk.bf16.mxu0 %vm144_vm1, %v1141_v46  ;;  %v1132_v48 = vpop.permute.xlu1 %1131  ;;  %v1138_v49 = vpop.permute.xlu0 %1137 }
  0xc7   :  { %v1143_v51 = vsel %vm1139_vm7, %v1132_v48, %v1134_v45  ;;  %v1145_v56 = vsel %vm1139_vm7, %v1136_v44, %v1138_v49  ;;  %v1142_v60 = vsel %vm1139_vm7, %v1130_v40, %v1132_v48  ;;  %v1674_v40 = vlaneseq }
  0xc8   :  { %1810 = vmatmul.mubr.msk.bf16.vlgmr.msra.gmra.mrb[4].mxu1 %vm140_vm2, %v1806_v29  ;;  %v1156_v2 = vsel %vm144_vm1, %v1142_v60, 0 }
  0xc9   :  { %1036 = vmatpush1.bf16.msra.mxu1 %v983_v52  ;;  %1067 = vmatprep.mubr.bf16.mxu1 %v1951_v3  ;;  %v1675_v41 = vshrl.u32 %v1674_v40, 7 }
  0xca   :  { %v1299_v54 = vpop.permute.xlu0 %1298  ;;  %1823 = vmatprep.subr.msk.bf16.mxu1 %vm144_vm1, %v1143_v51  ;;  %v1301_v55 = vpop.permute.xlu1 %1300  ;;  %v1671_v51 = vunpack.c.h.bf16 %v1669_v42 }
  0xcb   :  { %v1313_v9 = vsel %vm1312_vm8, %v1299_v54, %v1301_v55  ;;  %v1680_v43 = vsub.s32 2, %v1675_v41  ;;  %v1684_v44 = vsub.s32 4, %v1675_v41  ;;  %v1688_v45 = vsub.s32 6, %v1675_v41 }
  0xcc   :  { %1819 = vmatmul.mubr.msk.bf16.vlgmr.msra.gmra.mrb[4].mxu0 %vm140_vm2, %v1813_v4  ;;  %v1323_v13 = vsel %vm144_vm1, %v1313_v9, 0 }
  0xcd   :  { %1168 = vmatpush1.bf16.msra.mxu0 %v1150_v53  ;;  %1199 = vmatprep.mubr.bf16.mxu0 %v1951_v3 }
  0xce   :  { %1825 = vmatprep.subr.msk.bf16.mxu0 %vm144_vm1, %v1145_v56  ;;  %v1303_v57 = vpop.permute.xlu0 %1302  ;;  %v1307_v58 = vpop.permute.xlu1 %1306 }
  0xcf   :  { %v1314_v1 = vsel %vm1312_vm8, %v1301_v55, %v1303_v57 }
  0xd2   :  { %v1309_v63 = vpop.permute.xlu0 %1308  ;;  %v1311_v0 = vpop.permute.xlu1 %1310 }
  0xd3   :  { %v1318_v18 = vsel %vm1312_vm8, %v1309_v63, %v1311_v0  ;;  %v1317_v22 = vsel %vm1312_vm8, %v1307_v58, %v1309_v63 }
  0xd4   :  { %1817 = vmatmul.mubr.msk.bf16.vlgmr.msra.gmra.mrb[4].mxu1 %vm140_vm2, %v1813_v4  ;;  %1822 = vmatmul.mubr.msk.bf16.vlgmr.msra.gmra.mrb[0].mxu0 %vm140_vm2, %v1820_v61  ;;  %v1335_v25 = vsel %vm144_vm1, %v1317_v22, 0  ;;  %v1670_v4 = vunpack.c.l.bf16 %v1669_v42 }
  0xd5   :  { %1209 = vmatpush1.bf16.msra.mxu1 %v1156_v2  ;;  %1250 = vmatpush1.bf16.msra.mxu0 %v1162_v62  ;;  %v1697_v2 = vrot.slane %v1671_v51, %v1680_v43 }
  0xd6   :  { %1281 = vmatprep.mubr.bf16.mxu0 %v1951_v3  ;;  %1828 = vmatprep.subr.msk.bf16.mxu0 %vm144_vm1, %v1314_v1  ;;  %v1305_v5 = vpop.permute.xlu0 %1304  ;;  %v1472_v6 = vpop.permute.xlu1 %1471  ;;  %v1681_v47 = vrot.slane %v1670_v4, %v1680_v43  ;;  %v1685_v48 = vrot.slane %v1670_v4, %v1684_v44  ;;  %v1689_v49 = vrot.slane %v1670_v4, %v1688_v45 }
  0xd7   :  { %v1316_v10 = vsel %vm1312_vm8, %v1305_v5, %v1307_v58  ;;  %1240 = vmatprep.mubr.bf16.mxu1 %v1951_v3  ;;  %v1315_v17 = vsel %vm1312_vm8, %v1303_v57, %v1305_v5 }
  0xd8   :  { %1830 = vmatprep.subr.msk.bf16.mxu1 %vm144_vm1, %v1316_v10  ;;  %v1329_v19 = vsel %vm144_vm1, %v1315_v17, 0 }
  0xda   :  { %v1476_v15 = vpop.permute.xlu1 %1475  ;;  %v1474_v16 = vpop.permute.xlu0 %1473 }
  0xdb   :  { %v1487_v26 = vsel %vm1485_vm9, %v1474_v16, %v1476_v15  ;;  %v1486_v27 = vsel %vm1485_vm9, %v1472_v6, %v1474_v16 }
  0xdc   :  { %1826 = vmatmul.mubr.msk.bf16.vlgmr.msra.gmra.mrb[4].mxu0 %vm140_vm2, %v1820_v61  ;;  %v1496_v29 = vsel %vm144_vm1, %v1486_v27, 0 }
  0xdd   :  { %1341 = vmatpush1.bf16.msra.mxu0 %v1323_v13  ;;  %1372 = vmatprep.mubr.bf16.mxu0 %v1951_v3 }
  0xde   :  { %1832 = vmatprep.subr.msk.bf16.mxu0 %vm144_vm1, %v1318_v18  ;;  %v1480_v20 = vpop.permute.xlu1 %1479  ;;  %v1478_v21 = vpop.permute.xlu0 %1477 }
  0xdf   :  { %v1489_v23 = vsel %vm1485_vm9, %v1478_v21, %v1480_v20  ;;  %v1488_v7 = vsel %vm1485_vm9, %v1476_v15, %v1478_v21 }
  0xe0   :  { %1824 = vmatmul.mubr.msk.bf16.vlgmr.msra.gmra.mrb[4].mxu1 %vm140_vm2, %v1820_v61  ;;  %v1502_v30 = vsel %vm144_vm1, %v1488_v7, 0 }
  0xe1   :  { %1382 = vmatpush1.bf16.msra.mxu1 %v1329_v19  ;;  %1413 = vmatprep.mubr.bf16.mxu1 %v1951_v3 }
  0xe2   :  { %1837 = vmatprep.subr.msk.bf16.mxu1 %vm144_vm1, %v1489_v23  ;;  %v1482_v8 = vpop.permute.xlu0 %1481  ;;  %v1484_v28 = vpop.permute.xlu1 %1483 }
  0xe3   :  { %v1491_v31 = vsel %vm1485_vm9, %v1482_v8, %v1484_v28  ;;  %v1490_v32 = vsel %vm1485_vm9, %v1480_v20, %v1482_v8 }
  0xe4   :  { %1829 = vmatmul.mubr.msk.bf16.vlgmr.msra.gmra.mrb[0].mxu0 %vm140_vm2, %v1827_v24  ;;  %v1508_v33 = vsel %vm144_vm1, %v1490_v32, 0 }
  0xe5   :  { %1423 = vmatpush1.bf16.msra.mxu0 %v1335_v25  ;;  %1454 = vmatprep.mubr.bf16.mxu0 %v1951_v3 }
  0xe6   :  { %1835 = vmatprep.subr.msk.bf16.mxu0 %vm144_vm1, %v1487_v26 }
  0xec   :  { %1831 = vmatmul.mubr.msk.bf16.vlgmr.msra.gmra.mrb[4].mxu1 %vm140_vm2, %v1827_v24  ;;  %1833 = vmatmul.mubr.msk.bf16.vlgmr.msra.gmra.mrb[4].mxu0 %vm140_vm2, %v1827_v24 }
  0xed   :  { %1514 = vmatpush1.bf16.msra.mxu0 %v1496_v29  ;;  %1555 = vmatpush1.bf16.msra.mxu1 %v1502_v30 }
  0xee   :  { %1545 = vmatprep.mubr.bf16.mxu0 %v1951_v3  ;;  %1839 = vmatprep.subr.msk.bf16.mxu0 %vm144_vm1, %v1491_v31 }
  0xef   :  { %1586 = vmatprep.mubr.bf16.mxu1 %v1951_v3 }
  0xf4   :  { %1836 = vmatmul.mubr.msk.bf16.vlgmr.msra.gmra.mrb[0].mxu0 %vm140_vm2, %v1834_v14 }
  0xf5   :  { %1596 = vmatpush1.bf16.msra.mxu0 %v1508_v33  ;;  %1627 = vmatprep.mubr.bf16.mxu0 %v1951_v3  ;;  %v1676_v3 = vsub.s32 0, %v1675_v41 }
  0xf7   :  { %v1677_v46 = vrot.slane %v1670_v4, %v1676_v3  ;;  %v1711_v53 = vrot.slane %v1681_v47, %v1676_v3  ;;  %v1715_v56 = vrot.slane %v1685_v48, %v1676_v3  ;;  %v1719_v59 = vrot.slane %v1689_v49, %v1676_v3 }
  0xf8   :  { %1838 = vmatmul.mubr.msk.bf16.vlgmr.msra.gmra.mrb[4].mxu1 %vm140_vm2, %v1834_v14  ;;  %v1693_v62 = vrot.slane %v1671_v51, %v1676_v3  ;;  %v1727_v24 = vrot.slane %v1697_v2, %v1676_v3 }
  0xf9   :  { %v1707_v50 = vrot.slane %v1677_v46, %v1676_v3 }
  0xfa   :  { %v1723_v20 = vrot.slane %v1693_v62, %v1676_v3 }
  0xfc   :  { %1840 = vmatmul.mubr.msk.bf16.vlgmr.msra.gmra.mrb[4].mxu0 %vm140_vm2, %v1834_v14 }
 0x16b   :  { %v362_v34 = vpop.f32.mrb[0].mxu1 }
 0x16c   :  { %v364_v35 = vpop.f32.mrb[1].mxu1 }
 0x16d   :  { %v366_v36 = vpop.f32.mrb[2].mxu1 }
 0x16e   :  { %v367_v37 = vpop.f32.mrb[3].mxu1 }
 0x17b   :  { %v444_v11 = vpop.f32.mrb[8].mxu1 }
 0x17c   :  { %v446_v12 = vpop.f32.mrb[9].mxu1 }
 0x17d   :  { %v448_v38 = vpop.f32.mrb[10].mxu1 }
 0x17e   :  { %v449_v39 = vpop.f32.mrb[11].mxu1 }
 0x1c7   :  { %v1547_v52 = vpop.f32.mrb[0].mxu0 }
 0x1c8   :  { %v1847_v54 = vadd.f32 %v1547_v52, %v362_v34  ;;  %v1549_v55 = vpop.f32.mrb[1].mxu0 }
 0x1c9   :  { %v1848_v57 = vadd.f32 %v1549_v55, %v364_v35  ;;  %v1551_v58 = vpop.f32.mrb[2].mxu0 }
 0x1ca   :  { %v1728_v60 = vmul.f32 %v1847_v54, %v1707_v50  ;;  %v1552_v61 = vpop.f32.mrb[3].mxu0 }
 0x1cb   :  { %v1844_v63 = vpack.c.bf16 %v1848_v57, %v1847_v54  ;;  %v1729_v0 = vmul.f32 %v1848_v57, %v1711_v53  ;;  %v1588_v1 = vpop.f32.mrb[4].mxu1 }
 0x1cc   :  { %v1741_v5 = vmul.f32 %v1847_v54, %v1728_v60  ;;  %v1730_v6 = vmul.f32 %v1715_v56, %v1588_v1  ;;  %v1590_v9 = vpop.f32.mrb[5].mxu1 }
 0x1cd   :  { %1666 = vst [vmem:[%s2293_s5] sm:$0xff] %v1844_v63  ;;  %v1734_v10 = vadd.f32 %v1729_v0, %v1728_v60  ;;  %v1742_v13 = vmul.f32 %v1848_v57, %v1729_v0  ;;  %v1845_v15 = vpack.c.bf16 %v1590_v9, %v1588_v1  ;;  %v1731_v16 = vmul.f32 %v1719_v59, %v1590_v9  ;;  %v1592_v17 = vpop.f32.mrb[6].mxu1 }
 0x1ce   :  { %v1743_v18 = vmul.f32 %v1730_v6, %v1588_v1  ;;  %v1593_v19 = vpop.f32.mrb[7].mxu1 }
 0x1cf   :  { %v1747_v21 = vadd.f32 %v1742_v13, %v1741_v5  ;;  %v1735_v22 = vadd.f32 %v1734_v10, %v1730_v6  ;;  %1667 = vst [vmem:[%s2293_s5 + $0x8] sm:$0xff] %v1845_v15  ;;  %v1629_v23 = vpop.f32.mrb[4].mxu0  ;;  %v1744_v7 = vmul.f32 %v1731_v16, %v1590_v9 }
 0x1d0   :  { %v1849_v25 = vadd.f32 %v1629_v23, %v444_v11  ;;  %v1631_v26 = vpop.f32.mrb[5].mxu0 }
 0x1d1   :  { %v1748_v27 = vadd.f32 %v1747_v21, %v1743_v18  ;;  %v1850_v8 = vadd.f32 %v1631_v26, %v446_v12  ;;  %v1633_v28 = vpop.f32.mrb[6].mxu0  ;;  %v1736_v29 = vadd.f32 %v1735_v22, %v1731_v16 }
 0x1d2   :  { %v1732_v30 = vmul.f32 %v1849_v25, %v1723_v20  ;;  %v1634_v31 = vpop.f32.mrb[7].mxu0 }
 0x1d3   :  { %v1846_v32 = vpack.c.bf16 %v1850_v8, %v1849_v25  ;;  %v1733_v14 = vmul.f32 %v1850_v8, %v1727_v24  ;;  %v1749_v33 = vadd.f32 %v1748_v27, %v1744_v7 }
 0x1d4   :  { %v1745_v34 = vmul.f32 %v1849_v25, %v1732_v30  ;;  %v1737_v35 = vadd.f32 %v1736_v29, %v1732_v30 }
 0x1d5   :  { %1668 = vst [vmem:[%s2293_s5 + $0x10] sm:$0xff] %v1846_v32  ;;  %v1746_v36 = vmul.f32 %v1850_v8, %v1733_v14 }
 0x1d6   :  { %v1738_v37 = vadd.f32 %v1737_v35, %v1733_v14  ;;  %v1750_v11 = vadd.f32 %v1749_v33, %v1745_v34 }
 0x1d8   :  { %1739 = vadd.xlane.f32.xlu0 %v1738_v37  ;;  %v1751_v38 = vadd.f32 %v1750_v11, %v1746_v36 }
 0x1da   :  { %1752 = vadd.xlane.f32.xlu1 %v1751_v38 }
 0x265   :  { %v1740_v12 = vpop.xlane.xlu0 %1739 }
 0x267   :  { %v1753_v39 = vpop.xlane.xlu1 %1752 }
 0x268   :  { %v1755_v40 = vsel %vm640_vm5, %v1740_v12, %v1753_v39 }
 0x269   :  { %1757 = vst.msk [vmem:[%s2294_s6] sm:$0xff] %vm1756_vm10, %v1755_v40 }

// kernel: pruned_building_block_forward.4
= control target key start
LH: loop header
LB: loop body
LE: loop exit
PB: predicated region body
PF: predicated region fallthrough
CT: control target
= control target key end

     0   :  { %v2139_v0 = vmov 0   ;;  %v200_v3 = vlaneseq  ;;  %s2144_s29 = smov 127   ;;  %s2145_s30 = smov 111   ;;  %vm338_vm0 = vcmask 146432   ;;  %vm349_vm1 = vcmask 1043456   ;;  %s2558_s6 = inlined_call_operand.vmem [shape: f32[8,1], index: 6, kind: input, shape index: {}]   ;;  %s2559_s7 = inlined_call_operand.vmem [shape: f32[8,1], index: 7, kind: input, shape index: {}]   ;;  %s2560_s1 = inlined_call_operand.vmem [shape: bf16[8,768], index: 1, kind: input, shape index: {}, may-alias: {0,1,2}]   ;;  %s2561_s4 = inlined_call_operand.vmem [shape: bf16[1,768], index: 4, kind: input, shape index: {}, may-alias: {3,4,5}]   ;;  %s2562_s3 = inlined_call_operand.vmem [shape: bf16[1,768], index: 3, kind: input, shape index: {}, may-alias: {3,4,5}]   ;;  %s2563_s0 = inlined_call_operand.vmem [shape: bf16[8,768], index: 0, kind: input, shape index: {}, may-alias: {0,1,2}]   ;;  %s2564_s2 = inlined_call_operand.vmem [shape: bf16[8,768], index: 2, kind: input, shape index: {}, may-alias: {0,1,2}]   ;;  %s2565_s5 = inlined_call_operand.vmem [shape: bf16[1,768], index: 5, kind: input, shape index: {}, may-alias: {3,4,5}]   ;;  %s2566_s8 = inlined_call_operand.vmem [shape: bf16[9,4,8], index: 8, kind: input, shape index: {}]   ;;  %s2567_s9 = inlined_call_operand.vmem [shape: bf16[4,768], index: 9, kind: output, shape index: {0}]   ;;  %s2568_s10 = inlined_call_operand.vmem [shape: f32[1,4,2], index: 10, kind: output, shape index: {1}]  }
   0x1   :  { %2132 = vset.pattern.permute.xlu0 %v2139_v0  ;;  %v230_v1 = vld [vmem:[%s2558_s6] sm:$0xff]  ;;  %400 = vmatprep.mubr.bf16.mxu1 %v2139_v0  ;;  %v159_v5 = vld [vmem:[%s2560_s1 + $0x8] sm:$0xff]  ;;  %v160_v8 = vld [vmem:[%s2560_s1 + $0x10] sm:$0xff]  ;;  %s2146_s11 = smov 110   ;;  %s2147_s12 = smov 109   ;;  %vm345_vm2 = vcmask 64512  }
   0x2   :  { %233 = vperm.xlu0 %2132, %v230_v1   ;;  %732 = vmatprep.mubr.bf16.mxu0 %v2139_v0  ;;  %v244_v2 = vld [vmem:[%s2559_s7] sm:$0xff]  ;;  %v2219_v6 = vshrl.u32 %v200_v3, 7  ;;  %v1960_v11 = vcombine.high %v159_v5, %v159_v5  ;;  %v1959_v15 = vcombine.low %v159_v5, %v159_v5  ;;  %v1961_v16 = vcombine.low %v160_v8, %v160_v8  ;;  %v1956_v19 = vld [vmem:[%s2564_s2 + $0x14] sm:$0xf]  ;;  %s2141_s2 = smov 17  }
   0x3   :  { %v158_v4 = vld [vmem:[%s2560_s1] sm:$0xff]  ;;  %v1962_v17 = vcombine.high %v160_v8, %v160_v8  ;;  %v190_v32 = vunpack.c.l.bf16 %v1956_v19  ;;  %vm672_vm3 = vcmask 138240   ;;  %vm505_vm4 = vcmask 154624  }
   0x4   :  { %v2224_v7 = vld [vmem:[%s2561_s4] sm:$0x3f]  ;;  %v1957_v9 = vcombine.low %v158_v4, %v158_v4  ;;  %v1958_v10 = vcombine.high %v158_v4, %v158_v4  ;;  %v206_v12 = vsub.s32 2, %v2219_v6  ;;  %v2244_v21 = vsub.s32 0, %v2219_v6 }
   0x5   :  { %v192_v13 = vunpack.c.l.bf16 %v2224_v7  ;;  %v194_v14 = vld [vmem:[%s2562_s3] sm:$0x1]  ;;  %v1963_v20 = vld [vmem:[%s2565_s5 + $0x5] sm:$0x1]  ;;  %v210_v22 = vsub.s32 4, %v2219_v6  ;;  %v214_v23 = vsub.s32 6, %v2219_v6  ;;  %v193_v24 = vunpack.c.h.bf16 %v2224_v7 }
   0x6   :  { %247 = vperm.xlu0 %2132, %v244_v2   ;;  %v157_v18 = vld [vmem:[%s2563_s0] sm:$0xf]  ;;  %v184_v25 = vunpack.c.l.bf16 %v1957_v9  ;;  %v185_v26 = vunpack.c.l.bf16 %v1958_v10  ;;  %v187_v27 = vunpack.c.l.bf16 %v1960_v11  ;;  %v195_v28 = vunpack.c.l.bf16 %v194_v14  ;;  %s2140_s0 = smov 18   ;;  %s2142_s3 = smov 19  }
   0x7   :  { %v207_v30 = vrot.slane %v192_v13, %v206_v12  ;;  %v183_v31 = vunpack.c.l.bf16 %v157_v18  ;;  %v197_v33 = vunpack.c.l.bf16 %v1963_v20  ;;  %v186_v34 = vunpack.c.l.bf16 %v1959_v15  ;;  %s2143_s5 = smov 1  }
   0x8   :  { %v188_v35 = vunpack.c.l.bf16 %v1961_v16  ;;  %v189_v36 = vunpack.c.l.bf16 %v1962_v17  ;;  %v203_v37 = vrot.slane %v192_v13, %v2244_v21  ;;  %v211_v38 = vrot.slane %v192_v13, %v210_v22 }
   0x9   :  { %v215_v39 = vrot.slane %v192_v13, %v214_v23  ;;  %v223_v40 = vrot.slane %v193_v24, %v206_v12  ;;  %v269_v44 = vrot.slane %v195_v28, %v2244_v21  ;;  %v2252_v46 = vrot.slane %v207_v30, %v2244_v21 }
   0xa   :  { %v297_v49 = vrot.slane %v197_v33, %v2244_v21  ;;  %v2256_v55 = vrot.slane %v203_v37, %v2244_v21  ;;  %v219_v3 = vrot.slane %v193_v24, %v2244_v21  ;;  %v2264_v7 = vrot.slane %v211_v38, %v2244_v21  ;;  %v1964_v37 = vld [vmem:[%s2566_s8 + $0x2] sm:$0x3] }
   0xb   :  { %v2259_v61 = vrot.slane %v215_v39, %v2244_v21  ;;  %v2267_v11 = vrot.slane %v223_v40, %v2244_v21  ;;  %vm845_vm5 = vcmask 7168   ;;  %vm1171_vm6 = vcmask 1039360  }
   0xc   :  { %v2278_v22 = vrot.slane %v219_v3, %v2244_v21  ;;  %vm1344_vm7 = vcmask 908288   ;;  %vm1517_vm8 = vcmask 900096   ;;  %vm1690_vm9 = vcmask 891904  }
   0xd   :  { %vm1928_vm10 = vcmask 11264  }
  0x81   :  { %v234_v29 = vpop.permute.xlu0 %233 }
  0x82   :  { %v237_v41 = vmul.f32 %v234_v29, %v184_v25  ;;  %v238_v42 = vmul.f32 %v234_v29, %v185_v26  ;;  %v240_v43 = vmul.f32 %v234_v29, %v187_v27  ;;  %v236_v47 = vmul.f32 %v234_v29, %v183_v31 }
  0x83   :  { %v243_v48 = vmul.f32 %v234_v29, %v190_v32  ;;  %v242_v50 = vmul.f32 %v234_v29, %v189_v36  ;;  %v239_v54 = vmul.f32 %v234_v29, %v186_v34  ;;  %v241_v5 = vmul.f32 %v234_v29, %v188_v35 }
  0x85   :  { %v248_v45 = vpop.permute.xlu0 %247 }
  0x86   :  { %v251_v51 = vadd.f32 %v248_v45, %v237_v41  ;;  %v252_v52 = vadd.f32 %v248_v45, %v238_v42  ;;  %v254_v53 = vadd.f32 %v248_v45, %v240_v43  ;;  %v250_v56 = vadd.f32 %v248_v45, %v236_v47 }
  0x87   :  { %v257_v57 = vadd.f32 %v248_v45, %v243_v48  ;;  %v256_v58 = vadd.f32 %v248_v45, %v242_v50  ;;  %v253_v62 = vadd.f32 %v248_v45, %v239_v54  ;;  %v255_v14 = vadd.f32 %v248_v45, %v241_v5 }
  0x88   :  { %v260_v59 = vmax.f32 %v252_v52, 0.0  ;;  %v262_v60 = vmax.f32 %v254_v53, 0.0  ;;  %v259_v63 = vmax.f32 %v251_v51, 0.0  ;;  %v258_v1 = vmax.f32 %v250_v56, 0.0 }
  0x89   :  { %v265_v2 = vmax.f32 %v257_v57, 0.0  ;;  %v264_v10 = vmax.f32 %v256_v58, 0.0  ;;  %v261_v15 = vmax.f32 %v253_v62, 0.0  ;;  %v263_v20 = vmax.f32 %v255_v14, 0.0 }
  0x8a   :  { %v300_v4 = vmul.f32 %v2252_v46, %v260_v59  ;;  %v298_v8 = vmul.f32 %v269_v44, %v258_v1  ;;  %v302_v12 = vmul.f32 %v2259_v61, %v262_v60  ;;  %v299_v16 = vmul.f32 %v2256_v55, %v259_v63  ;;  %v2365_v60 = vld [vmem:[%s2566_s8 + $0x4] sm:$0x3] }
  0x8b   :  { %v305_v9 = vmul.f32 %v297_v49, %v265_v2  ;;  %v304_v18 = vmul.f32 %v2267_v11, %v264_v10  ;;  %v301_v23 = vmul.f32 %v2264_v7, %v261_v15  ;;  %v303_v26 = vmul.f32 %v2278_v22, %v263_v20 }
  0x8c   :  { %v2270_v13 = vpack.c.bf16 %v300_v4, %v300_v4  ;;  %v306_v17 = vpack.c.bf16 %v298_v8, %v298_v8  ;;  %v2275_v19 = vpack.c.bf16 %v302_v12, %v302_v12  ;;  %v2281_v24 = vpack.c.bf16 %v299_v16, %v299_v16  ;;  %v314_v4 = vld [vmem:[%s2566_s8] sm:$0x3] }
  0x8d   :  { %v2285_v25 = vpack.c.bf16 %v304_v18, %v304_v18  ;;  %v2288_v27 = vpack.c.bf16 %v301_v23, %v301_v23  ;;  %v2292_v21 = vpack.c.bf16 %v303_v26, %v303_v26  ;;  %v313_v28 = vpack.c.bf16 %v305_v9, %v305_v9 }
  0x8e   :  { %328 = vrot.lane.b32.xlu0 %v2270_v13, %s2140_s0  ;;  %324 = vrot.lane.b32.xlu1 %v306_v17, %s2140_s0 }
  0x92   :  { %332 = vrot.lane.b32.xlu0 %v2275_v19, %s2140_s0  ;;  %326 = vrot.lane.b32.xlu1 %v2281_v24, %s2140_s0 }
  0x96   :  { %336 = vrot.lane.b32.xlu0 %v2285_v25, %s2140_s0  ;;  %330 = vrot.lane.b32.xlu1 %v2288_v27, %s2140_s0 }
  0x9a   :  { %660 = vrot.lane.b32.xlu0 %v2281_v24, %s2141_s2  ;;  %334 = vrot.lane.b32.xlu1 %v2292_v21, %s2140_s0 }
  0x9e   :  { %491 = vrot.lane.b32.xlu0 %v306_v17, %s2142_s3  ;;  %658 = vrot.lane.b32.xlu1 %v306_v17, %s2141_s2 }
  0xa2   :  { %495 = vrot.lane.b32.xlu0 %v2270_v13, %s2142_s3  ;;  %662 = vrot.lane.b32.xlu1 %v2270_v13, %s2141_s2 }
  0xa6   :  { %668 = vrot.lane.b32.xlu0 %v2292_v21, %s2141_s2  ;;  %493 = vrot.lane.b32.xlu1 %v2281_v24, %s2142_s3 }
  0xaa   :  { %497 = vrot.lane.b32.xlu0 %v2288_v27, %s2142_s3  ;;  %666 = vrot.lane.b32.xlu1 %v2275_v19, %s2141_s2 }
  0xae   :  { %831 = vrot.lane.b32.xlu0 %v306_v17, %s2143_s5  ;;  %670 = vrot.lane.b32.xlu1 %v2285_v25, %s2141_s2 }
  0xb2   :  { %835 = vrot.lane.b32.xlu0 %v2270_v13, %s2143_s5  ;;  %499 = vrot.lane.b32.xlu1 %v2275_v19, %s2142_s3 }
  0xb6   :  { %503 = vrot.lane.b32.xlu0 %v2285_v25, %s2142_s3  ;;  %833 = vrot.lane.b32.xlu1 %v2281_v24, %s2143_s5 }
  0xba   :  { %841 = vrot.lane.b32.xlu0 %v2292_v21, %s2143_s5  ;;  %501 = vrot.lane.b32.xlu1 %v2292_v21, %s2142_s3 }
  0xbe   :  { %664 = vrot.lane.b32.xlu0 %v2288_v27, %s2141_s2  ;;  %839 = vrot.lane.b32.xlu1 %v2275_v19, %s2143_s5 }
  0xc2   :  { %1157 = vrot.lane.b32.xlu0 %v2281_v24, %s2144_s29  ;;  %843 = vrot.lane.b32.xlu1 %v2285_v25, %s2143_s5 }
  0xc6   :  { %1161 = vrot.lane.b32.xlu0 %v2288_v27, %s2144_s29  ;;  %837 = vrot.lane.b32.xlu1 %v2288_v27, %s2143_s5 }
  0xca   :  { %1167 = vrot.lane.b32.xlu0 %v2285_v25, %s2144_s29  ;;  %1159 = vrot.lane.b32.xlu1 %v2270_v13, %s2144_s29 }
  0xce   :  { %1330 = vrot.lane.b32.xlu0 %v2281_v24, %s2145_s30  ;;  %1165 = vrot.lane.b32.xlu1 %v2292_v21, %s2144_s29 }
  0xd2   :  { %1334 = vrot.lane.b32.xlu0 %v2288_v27, %s2145_s30  ;;  %1169 = vrot.lane.b32.xlu1 %v313_v28, %s2144_s29 }
  0xd6   :  { %1338 = vrot.lane.b32.xlu0 %v2292_v21, %s2145_s30  ;;  %1332 = vrot.lane.b32.xlu1 %v2270_v13, %s2145_s30 }
  0xda   :  { %1342 = vrot.lane.b32.xlu0 %v313_v28, %s2145_s30  ;;  %1163 = vrot.lane.b32.xlu1 %v2275_v19, %s2144_s29 }
  0xde   :  { %1503 = vrot.lane.b32.xlu0 %v2281_v24, %s2146_s11  ;;  %1340 = vrot.lane.b32.xlu1 %v2285_v25, %s2145_s30 }
  0xe2   :  { %1507 = vrot.lane.b32.xlu0 %v2288_v27, %s2146_s11  ;;  %1336 = vrot.lane.b32.xlu1 %v2275_v19, %s2145_s30 }
  0xe6   :  { %1513 = vrot.lane.b32.xlu0 %v2285_v25, %s2146_s11  ;;  %1505 = vrot.lane.b32.xlu1 %v2270_v13, %s2146_s11 }
  0xea   :  { %1509 = vrot.lane.b32.xlu0 %v2275_v19, %s2146_s11  ;;  %1511 = vrot.lane.b32.xlu1 %v2292_v21, %s2146_s11 }
  0xee   :  { %1678 = vrot.lane.b32.xlu0 %v2270_v13, %s2147_s12  ;;  %1515 = vrot.lane.b32.xlu1 %v313_v28, %s2146_s11 }
  0xf2   :  { %1682 = vrot.lane.b32.xlu0 %v2275_v19, %s2147_s12  ;;  %1676 = vrot.lane.b32.xlu1 %v2281_v24, %s2147_s12 }
  0xf6   :  { %1686 = vrot.lane.b32.xlu0 %v2285_v25, %s2147_s12  ;;  %1680 = vrot.lane.b32.xlu1 %v2288_v27, %s2147_s12 }
  0xfa   :  { %1684 = vrot.lane.b32.xlu1 %v2292_v21, %s2147_s12 }
  0xfe   :  { %1688 = vrot.lane.b32.xlu1 %v313_v28, %s2147_s12 }
 0x100   :  { %v329_v29 = vpop.permute.xlu0 %328  ;;  %v325_v30 = vpop.permute.xlu1 %324 }
 0x104   :  { %v333_v31 = vpop.permute.xlu0 %332  ;;  %v327_v32 = vpop.permute.xlu1 %326 }
 0x105   :  { %v340_v33 = vsel %vm338_vm0, %v327_v32, %v329_v29  ;;  %v339_v34 = vsel %vm338_vm0, %v325_v30, %v327_v32 }
 0x106   :  { %1965 = vmatprep.subr.msk.bf16.mxu1 %vm349_vm1, %v340_v33  ;;  %v351_v35 = vsel %vm349_vm1, %v339_v34, 0 }
 0x107   :  { %369 = vmatpush1.bf16.msra.mxu1 %v351_v35 }
 0x108   :  { %v337_v36 = vpop.permute.xlu0 %336  ;;  %v331_v38 = vpop.permute.xlu1 %330 }
 0x109   :  { %v341_v39 = vsel %vm338_vm0, %v329_v29, %v331_v38  ;;  %v342_v40 = vsel %vm338_vm0, %v331_v38, %v333_v31  ;;  %v1984_v29 = vld [vmem:[%s2566_s8 + $0x6] sm:$0x3] }
 0x10a   :  { %v357_v41 = vsel %vm349_vm1, %v341_v39, 0  ;;  %1966 = vmatmul.mubr.msk.bf16.vlgmr.msra.gmra.mrb[0].mxu1 %vm345_vm2, %v1964_v37  ;;  %1967 = vmatprep.subr.msk.bf16.mxu1 %vm349_vm1, %v342_v40 }
 0x10b   :  { %410 = vmatpush1.bf16.msra.mxu1 %v357_v41  ;;  %441 = vmatprep.mubr.bf16.mxu1 %v2139_v0 }
 0x10c   :  { %v661_v42 = vpop.permute.xlu0 %660  ;;  %v335_v43 = vpop.permute.xlu1 %334 }
 0x10d   :  { %v344_v44 = vsel %vm338_vm0, %v335_v43, %v337_v36  ;;  %v343_v45 = vsel %vm338_vm0, %v333_v31, %v335_v43 }
 0x10e   :  { %1969 = vmatprep.subr.msk.bf16.mxu1 %vm349_vm1, %v344_v44  ;;  %v363_v49 = vsel %vm349_vm1, %v343_v45, 0 }
 0x110   :  { %v492_v47 = vpop.permute.xlu0 %491  ;;  %v659_v48 = vpop.permute.xlu1 %658 }
 0x111   :  { %v673_v51 = vsel %vm672_vm3, %v659_v48, %v661_v42 }
 0x112   :  { %1968 = vmatmul.mubr.msk.bf16.vlgmr.msra.gmra.mrb[4].mxu1 %vm345_vm2, %v1964_v37  ;;  %v683_v54 = vsel %vm349_vm1, %v673_v51, 0 }
 0x113   :  { %451 = vmatpush1.bf16.msra.mxu1 %v363_v49  ;;  %482 = vmatprep.mubr.bf16.mxu1 %v2139_v0 }
 0x114   :  { %v496_v50 = vpop.permute.xlu0 %495  ;;  %v663_v52 = vpop.permute.xlu1 %662 }
 0x115   :  { %v674_v53 = vsel %vm672_vm3, %v661_v42, %v663_v52 }
 0x116   :  { %1978 = vmatprep.subr.msk.bf16.mxu0 %vm349_vm1, %v674_v53 }
 0x117   :  { %701 = vmatpush1.bf16.msra.mxu0 %v683_v54  ;;  %v1991_v54 = vld [vmem:[%s2566_s8 + $0x8] sm:$0x3] }
 0x118   :  { %v669_v56 = vpop.permute.xlu0 %668  ;;  %v494_v57 = vpop.permute.xlu1 %493 }
 0x119   :  { %v506_v58 = vsel %vm505_vm4, %v492_v47, %v494_v57  ;;  %v507_v59 = vsel %vm505_vm4, %v494_v57, %v496_v50  ;;  %v1014_v57 = vsel %vm349_vm1, %v2288_v27, 0 }
 0x11a   :  { %v516_v62 = vsel %vm349_vm1, %v506_v58, 0  ;;  %1970 = vmatmul.mubr.msk.bf16.vlgmr.msra.gmra.mrb[8].mxu1 %vm345_vm2, %v1964_v37  ;;  %1971 = vmatprep.subr.msk.bf16.mxu1 %vm349_vm1, %v507_v59 }
 0x11b   :  { %534 = vmatpush1.bf16.msra.mxu1 %v516_v62  ;;  %565 = vmatprep.mubr.bf16.mxu1 %v2139_v0 }
 0x11c   :  { %v498_v63 = vpop.permute.xlu0 %497  ;;  %v667_v1 = vpop.permute.xlu1 %666  ;;  %1979 = vmatmul.mubr.msk.bf16.vlgmr.msra.gmra.mrb[0].mxu0 %vm345_vm2, %v2365_v60 }
 0x11d   :  { %814 = vmatprep.mubr.bf16.mxu0 %v2139_v0  ;;  %v677_v2 = vsel %vm672_vm3, %v667_v1, %v669_v56  ;;  %v508_v10 = vsel %vm505_vm4, %v496_v50, %v498_v63  ;;  %v1008_v50 = vsel %vm349_vm1, %v2281_v24, 0 }
 0x11e   :  { %v695_v9 = vsel %vm349_vm1, %v677_v2, 0  ;;  %v522_v16 = vsel %vm349_vm1, %v508_v10, 0 }
 0x120   :  { %v832_v3 = vpop.permute.xlu0 %831  ;;  %v671_v5 = vpop.permute.xlu1 %670 }
 0x121   :  { %v678_v8 = vsel %vm672_vm3, %v669_v56, %v671_v5 }
 0x122   :  { %1972 = vmatmul.mubr.msk.bf16.vlgmr.msra.gmra.mrb[0].mxu1 %vm345_vm2, %v314_v4  ;;  %1982 = vmatprep.subr.msk.bf16.mxu0 %vm349_vm1, %v678_v8  ;;  %v1998_v8 = vld [vmem:[%s2566_s8 + $0xa] sm:$0x3] }
 0x123   :  { %783 = vmatpush1.bf16.msra.mxu0 %v695_v9  ;;  %606 = vmatprep.mubr.bf16.mxu1 %v2139_v0 }
 0x124   :  { %v836_v12 = vpop.permute.xlu0 %835  ;;  %v500_v14 = vpop.permute.xlu1 %499 }
 0x125   :  { %v509_v15 = vsel %vm505_vm4, %v498_v63, %v500_v14 }
 0x126   :  { %1973 = vmatprep.subr.msk.bf16.mxu1 %vm349_vm1, %v509_v15  ;;  %1983 = vmatmul.mubr.msk.bf16.vlgmr.msra.gmra.mrb[4].mxu0 %vm345_vm2, %v2365_v60 }
 0x127   :  { %575 = vmatpush1.bf16.msra.mxu1 %v522_v16  ;;  %905 = vmatprep.mubr.bf16.mxu0 %v2139_v0 }
 0x128   :  { %v504_v17 = vpop.permute.xlu0 %503  ;;  %v834_v18 = vpop.permute.xlu1 %833 }
 0x129   :  { %v846_v20 = vsel %vm845_vm5, %v832_v3, %v834_v18  ;;  %v847_v23 = vsel %vm845_vm5, %v834_v18, %v836_v12 }
 0x12a   :  { %v856_v26 = vsel %vm349_vm1, %v846_v20, 0  ;;  %1974 = vmatmul.mubr.msk.bf16.vlgmr.msra.gmra.mrb[4].mxu1 %vm345_vm2, %v314_v4  ;;  %1985 = vmatprep.subr.msk.bf16.mxu0 %vm349_vm1, %v847_v23 }
 0x12b   :  { %874 = vmatpush1.bf16.msra.mxu0 %v856_v26  ;;  %647 = vmatprep.mubr.bf16.mxu1 %v2139_v0 }
 0x12c   :  { %v842_v28 = vpop.permute.xlu0 %841  ;;  %v502_v30 = vpop.permute.xlu1 %501 }
 0x12d   :  { %v510_v31 = vsel %vm505_vm4, %v500_v14, %v502_v30  ;;  %v511_v32 = vsel %vm505_vm4, %v502_v30, %v504_v17 }
 0x12e   :  { %v528_v33 = vsel %vm349_vm1, %v510_v31, 0  ;;  %1975 = vmatprep.subr.msk.bf16.mxu1 %vm349_vm1, %v511_v32  ;;  %1986 = vmatmul.mubr.msk.bf16.vlgmr.msra.gmra.mrb[0].mxu0 %vm345_vm2, %v1984_v29 }
 0x12f   :  { %616 = vmatpush1.bf16.msra.mxu1 %v528_v33  ;;  %987 = vmatprep.mubr.bf16.mxu0 %v2139_v0 }
 0x130   :  { %v665_v34 = vpop.permute.xlu0 %664  ;;  %v840_v37 = vpop.permute.xlu1 %839 }
 0x131   :  { %v675_v35 = vsel %vm672_vm3, %v663_v52, %v665_v34  ;;  %v676_v36 = vsel %vm672_vm3, %v665_v34, %v667_v1  ;;  %v850_v39 = vsel %vm845_vm5, %v840_v37, %v842_v28 }
 0x132   :  { %v689_v38 = vsel %vm349_vm1, %v675_v35, 0  ;;  %1980 = vmatprep.subr.msk.bf16.mxu1 %vm349_vm1, %v676_v36  ;;  %1976 = vmatmul.mubr.msk.bf16.vlgmr.msra.gmra.mrb[8].mxu1 %vm345_vm2, %v314_v4  ;;  %v868_v43 = vsel %vm349_vm1, %v850_v39, 0  ;;  %v2005_v35 = vld [vmem:[%s2566_s8 + $0xc] sm:$0x3] }
 0x133   :  { %742 = vmatpush1.bf16.msra.mxu1 %v689_v38  ;;  %773 = vmatprep.mubr.bf16.mxu1 %v2139_v0 }
 0x134   :  { %v1158_v40 = vpop.permute.xlu0 %1157  ;;  %v844_v41 = vpop.permute.xlu1 %843 }
 0x135   :  { %v851_v42 = vsel %vm845_vm5, %v842_v28, %v844_v41 }
 0x136   :  { %1989 = vmatprep.subr.msk.bf16.mxu0 %vm349_vm1, %v851_v42 }
 0x137   :  { %956 = vmatpush1.bf16.msra.mxu0 %v868_v43 }
 0x138   :  { %v1162_v44 = vpop.permute.xlu0 %1161  ;;  %1992 = vmatprep.subr.msk.bf16.mxu0 %vm349_vm1, %v2270_v13  ;;  %v838_v45 = vpop.permute.xlu1 %837 }
 0x139   :  { %v848_v47 = vsel %vm845_vm5, %v836_v12, %v838_v45  ;;  %v849_v48 = vsel %vm845_vm5, %v838_v45, %v840_v37 }
 0x13a   :  { %v862_v49 = vsel %vm349_vm1, %v848_v47, 0  ;;  %1981 = vmatmul.mubr.msk.bf16.vlgmr.msra.gmra.mrb[4].mxu1 %vm345_vm2, %v2365_v60  ;;  %1987 = vmatprep.subr.msk.bf16.mxu1 %vm349_vm1, %v849_v48 }
 0x13b   :  { %1990 = vmatmul.mubr.msk.bf16.vlgmr.msra.gmra.mrb[4].mxu0 %vm345_vm2, %v1984_v29  ;;  %915 = vmatpush1.bf16.msra.mxu1 %v862_v49 }
 0x13c   :  { %v1168_v51 = vpop.permute.xlu0 %1167  ;;  %1026 = vmatpush1.bf16.msra.mxu0 %v1008_v50  ;;  %1994 = vmatprep.subr.msk.bf16.mxu1 %vm349_vm1, %v2275_v19  ;;  %v1160_v13 = vpop.permute.xlu1 %1159  ;;  %v1020_v19 = vsel %vm349_vm1, %v2292_v21, 0 }
 0x13d   :  { %1996 = vmatprep.subr.msk.bf16.mxu0 %vm349_vm1, %v2285_v25  ;;  %1057 = vmatprep.mubr.bf16.mxu0 %v2139_v0  ;;  %v1173_v56 = vsel %vm1171_vm6, %v1160_v13, %v1162_v44  ;;  %v1172_v21 = vsel %vm1171_vm6, %v1158_v40, %v1160_v13 }
 0x13e   :  { %946 = vmatprep.mubr.bf16.mxu1 %v2139_v0  ;;  %v1182_v60 = vsel %vm349_vm1, %v1172_v21, 0 }
 0x140   :  { %v1331_v52 = vpop.permute.xlu0 %1330  ;;  %v1166_v53 = vpop.permute.xlu1 %1165 }
 0x141   :  { %v1176_v4 = vsel %vm1171_vm6, %v1166_v53, %v1168_v51 }
 0x142   :  { %v1194_v10 = vsel %vm349_vm1, %v1176_v4, 0 }
 0x143   :  { %1993 = vmatmul.mubr.msk.bf16.vlgmr.msra.gmra.mrb[0].mxu0 %vm345_vm2, %v1991_v54 }
 0x144   :  { %v1335_v24 = vpop.permute.xlu0 %1334  ;;  %1108 = vmatpush1.bf16.msra.mxu0 %v1020_v19  ;;  %v1170_v25 = vpop.permute.xlu1 %1169  ;;  %1139 = vmatprep.mubr.bf16.mxu0 %v2139_v0 }
 0x145   :  { %1999 = vmatprep.subr.msk.bf16.mxu0 %vm349_vm1, %v1173_v56  ;;  %v1177_v63 = vsel %vm1171_vm6, %v1168_v51, %v1170_v25  ;;  %v2012_v51 = vld [vmem:[%s2566_s8 + $0xe] sm:$0x3] }
 0x146   :  { %1988 = vmatmul.mubr.msk.bf16.vlgmr.msra.gmra.mrb[4].mxu1 %vm345_vm2, %v1984_v29 }
 0x147   :  { %1067 = vmatpush1.bf16.msra.mxu1 %v1014_v57  ;;  %1098 = vmatprep.mubr.bf16.mxu1 %v2139_v0 }
 0x148   :  { %v1339_v58 = vpop.permute.xlu0 %1338  ;;  %v1333_v59 = vpop.permute.xlu1 %1332 }
 0x149   :  { %v1346_v14 = vsel %vm1344_vm7, %v1333_v59, %v1335_v24  ;;  %v1345_v18 = vsel %vm1344_vm7, %v1331_v52, %v1333_v59 }
 0x14a   :  { %v1355_v23 = vsel %vm349_vm1, %v1345_v18, 0 }
 0x14b   :  { %1997 = vmatmul.mubr.msk.bf16.vlgmr.msra.gmra.mrb[4].mxu0 %vm345_vm2, %v1991_v54 }
 0x14c   :  { %v1343_v62 = vpop.permute.xlu0 %1342  ;;  %1200 = vmatpush1.bf16.msra.mxu0 %v1182_v60  ;;  %v1164_v1 = vpop.permute.xlu1 %1163  ;;  %1231 = vmatprep.mubr.bf16.mxu0 %v2139_v0 }
 0x14d   :  { %2003 = vmatprep.subr.msk.bf16.mxu0 %vm349_vm1, %v1177_v63  ;;  %v1175_v27 = vsel %vm1171_vm6, %v1164_v1, %v1166_v53  ;;  %v1174_v2 = vsel %vm1171_vm6, %v1162_v44, %v1164_v1 }
 0x14e   :  { %2001 = vmatprep.subr.msk.bf16.mxu1 %vm349_vm1, %v1175_v27  ;;  %v1188_v9 = vsel %vm349_vm1, %v1174_v2, 0 }
 0x150   :  { %v1504_v3 = vpop.permute.xlu0 %1503  ;;  %v1341_v5 = vpop.permute.xlu1 %1340 }
 0x151   :  { %v1350_v29 = vsel %vm1344_vm7, %v1341_v5, %v1343_v62  ;;  %v1349_v33 = vsel %vm1344_vm7, %v1339_v58, %v1341_v5  ;;  %v2148_v5 = vmov 1983009808  }
 0x152   :  { %1995 = vmatmul.mubr.msk.bf16.vlgmr.msra.gmra.mrb[4].mxu1 %vm345_vm2, %v1991_v54  ;;  %v1367_v36 = vsel %vm349_vm1, %v1349_v33, 0 }
 0x153   :  { %2000 = vmatmul.mubr.msk.bf16.vlgmr.msra.gmra.mrb[0].mxu0 %vm345_vm2, %v1998_v8  ;;  %1241 = vmatpush1.bf16.msra.mxu1 %v1188_v9 }
 0x154   :  { %v1508_v12 = vpop.permute.xlu0 %1507  ;;  %1282 = vmatpush1.bf16.msra.mxu0 %v1194_v10  ;;  %v1337_v15 = vpop.permute.xlu1 %1336  ;;  %1313 = vmatprep.mubr.bf16.mxu0 %v2139_v0 }
 0x155   :  { %2006 = vmatprep.subr.msk.bf16.mxu0 %vm349_vm1, %v1346_v14  ;;  %v1348_v16 = vsel %vm1344_vm7, %v1337_v15, %v1339_v58  ;;  %1272 = vmatprep.mubr.bf16.mxu1 %v2139_v0  ;;  %v1347_v26 = vsel %vm1344_vm7, %v1335_v24, %v1337_v15  ;;  %v2019_v58 = vld [vmem:[%s2566_s8 + $0x10] sm:$0x3] }
 0x156   :  { %2008 = vmatprep.subr.msk.bf16.mxu1 %vm349_vm1, %v1348_v16  ;;  %v1361_v32 = vsel %vm349_vm1, %v1347_v26, 0 }
 0x158   :  { %v1514_v17 = vpop.permute.xlu0 %1513  ;;  %v1506_v20 = vpop.permute.xlu1 %1505 }
 0x159   :  { %v1519_v37 = vsel %vm1517_vm8, %v1506_v20, %v1508_v12  ;;  %v1518_v41 = vsel %vm1517_vm8, %v1504_v3, %v1506_v20 }
 0x15a   :  { %v1528_v44 = vsel %vm349_vm1, %v1518_v41, 0 }
 0x15b   :  { %2004 = vmatmul.mubr.msk.bf16.vlgmr.msra.gmra.mrb[4].mxu0 %vm345_vm2, %v1998_v8 }
 0x15c   :  { %v1510_v28 = vpop.permute.xlu0 %1509  ;;  %1373 = vmatpush1.bf16.msra.mxu0 %v1355_v23  ;;  %v1512_v30 = vpop.permute.xlu1 %1511  ;;  %1404 = vmatprep.mubr.bf16.mxu0 %v2139_v0 }
 0x15d   :  { %2010 = vmatprep.subr.msk.bf16.mxu0 %vm349_vm1, %v1350_v29  ;;  %v1521_v31 = vsel %vm1517_vm8, %v1510_v28, %v1512_v30  ;;  %v1520_v40 = vsel %vm1517_vm8, %v1508_v12, %v1510_v28  ;;  %v1522_v50 = vsel %vm1517_vm8, %v1512_v30, %v1514_v17 }
 0x15e   :  { %2002 = vmatmul.mubr.msk.bf16.vlgmr.msra.gmra.mrb[4].mxu1 %vm345_vm2, %v1998_v8  ;;  %v1534_v43 = vsel %vm349_vm1, %v1520_v40, 0  ;;  %v1540_v13 = vsel %vm349_vm1, %v1522_v50, 0  ;;  %v1862_v8 = vunpack.c.l.s4 %v2148_v5 }
 0x15f   :  { %1414 = vmatpush1.bf16.msra.mxu1 %v1361_v32  ;;  %1445 = vmatprep.mubr.bf16.mxu1 %v2139_v0 }
 0x160   :  { %2015 = vmatprep.subr.msk.bf16.mxu1 %vm349_vm1, %v1521_v31  ;;  %v1516_v34 = vpop.permute.xlu1 %1515  ;;  %v1679_v39 = vpop.permute.xlu0 %1678  ;;  %v1863_v9 = vunpack.c.0.s8 %v1862_v8 }
 0x161   :  { %v1523_v45 = vsel %vm1517_vm8, %v1514_v17, %v1516_v34 }
 0x162   :  { %v1866_v23 = vsub.s32 %v1863_v9, %v2219_v6 }
 0x163   :  { %2007 = vmatmul.mubr.msk.bf16.vlgmr.msra.gmra.mrb[0].mxu0 %vm345_vm2, %v2005_v35 }
 0x164   :  { %1455 = vmatpush1.bf16.msra.mxu0 %v1367_v36  ;;  %v1677_v38 = vpop.permute.xlu1 %1676  ;;  %1486 = vmatprep.mubr.bf16.mxu0 %v2139_v0  ;;  %v1683_v47 = vpop.permute.xlu0 %1682 }
 0x165   :  { %2013 = vmatprep.subr.msk.bf16.mxu0 %vm349_vm1, %v1519_v37  ;;  %v1691_v19 = vsel %vm1690_vm9, %v1677_v38, %v1679_v39 }
 0x166   :  { %v1701_v56 = vsel %vm349_vm1, %v1691_v19, 0 }
 0x168   :  { %v1681_v42 = vpop.permute.xlu1 %1680  ;;  %v1687_v25 = vpop.permute.xlu0 %1686 }
 0x169   :  { %v1693_v52 = vsel %vm1690_vm9, %v1681_v42, %v1683_v47  ;;  %v1692_v53 = vsel %vm1690_vm9, %v1679_v39, %v1681_v42 }
 0x16a   :  { %2009 = vmatmul.mubr.msk.bf16.vlgmr.msra.gmra.mrb[4].mxu1 %vm345_vm2, %v2005_v35  ;;  %v1707_v54 = vsel %vm349_vm1, %v1693_v52, 0 }
 0x16b   :  { %2011 = vmatmul.mubr.msk.bf16.vlgmr.msra.gmra.mrb[4].mxu0 %vm345_vm2, %v2005_v35  ;;  %1587 = vmatpush1.bf16.msra.mxu1 %v1534_v43 }
 0x16c   :  { %1546 = vmatpush1.bf16.msra.mxu0 %v1528_v44  ;;  %v1685_v48 = vpop.permute.xlu1 %1684  ;;  %1577 = vmatprep.mubr.bf16.mxu0 %v2139_v0 }
 0x16d   :  { %2017 = vmatprep.subr.msk.bf16.mxu0 %vm349_vm1, %v1523_v45  ;;  %v1694_v49 = vsel %vm1690_vm9, %v1683_v47, %v1685_v48  ;;  %1618 = vmatprep.mubr.bf16.mxu1 %v2139_v0  ;;  %v1695_v21 = vsel %vm1690_vm9, %v1685_v48, %v1687_v25 }
 0x16e   :  { %2022 = vmatprep.subr.msk.bf16.mxu1 %vm349_vm1, %v1694_v49  ;;  %v1713_v59 = vsel %vm349_vm1, %v1695_v21, 0 }
 0x170   :  { %v1689_v24 = vpop.permute.xlu1 %1688 }
 0x171   :  { %v1696_v57 = vsel %vm1690_vm9, %v1687_v25, %v1689_v24 }
 0x173   :  { %2014 = vmatmul.mubr.msk.bf16.vlgmr.msra.gmra.mrb[0].mxu0 %vm345_vm2, %v2012_v51 }
 0x174   :  { %1628 = vmatpush1.bf16.msra.mxu0 %v1540_v13  ;;  %1659 = vmatprep.mubr.bf16.mxu0 %v2139_v0 }
 0x175   :  { %2020 = vmatprep.subr.msk.bf16.mxu0 %vm349_vm1, %v1692_v53 }
 0x176   :  { %2016 = vmatmul.mubr.msk.bf16.vlgmr.msra.gmra.mrb[4].mxu1 %vm345_vm2, %v2012_v51 }
 0x177   :  { %1760 = vmatpush1.bf16.msra.mxu1 %v1707_v54  ;;  %1791 = vmatprep.mubr.bf16.mxu1 %v2139_v0 }
 0x17b   :  { %2018 = vmatmul.mubr.msk.bf16.vlgmr.msra.gmra.mrb[4].mxu0 %vm345_vm2, %v2012_v51 }
 0x17c   :  { %1719 = vmatpush1.bf16.msra.mxu0 %v1701_v56  ;;  %1750 = vmatprep.mubr.bf16.mxu0 %v2139_v0 }
 0x17d   :  { %2024 = vmatprep.subr.msk.bf16.mxu0 %vm349_vm1, %v1696_v57 }
 0x182   :  { %2023 = vmatmul.mubr.msk.bf16.vlgmr.msra.gmra.mrb[4].mxu1 %vm345_vm2, %v2019_v58 }
 0x183   :  { %2021 = vmatmul.mubr.msk.bf16.vlgmr.msra.gmra.mrb[0].mxu0 %vm345_vm2, %v2019_v58 }
 0x184   :  { %1801 = vmatpush1.bf16.msra.mxu0 %v1713_v59  ;;  %1832 = vmatprep.mubr.bf16.mxu0 %v2139_v0 }
 0x18b   :  { %2025 = vmatmul.mubr.msk.bf16.vlgmr.msra.gmra.mrb[4].mxu0 %vm345_vm2, %v2019_v58 }
 0x1f5   :  { %v567_v60 = vpop.f32.mrb[0].mxu1 }
 0x1f6   :  { %v569_v62 = vpop.f32.mrb[1].mxu1 }
 0x1f7   :  { %v571_v63 = vpop.f32.mrb[2].mxu1 }
 0x1f8   :  { %v572_v1 = vpop.f32.mrb[3].mxu1 }
 0x205   :  { %v649_v27 = vpop.f32.mrb[8].mxu1 }
 0x206   :  { %v651_v2 = vpop.f32.mrb[9].mxu1 }
 0x207   :  { %v653_v3 = vpop.f32.mrb[10].mxu1 }
 0x208   :  { %v654_v4 = vpop.f32.mrb[11].mxu1 }
 0x255   :  { %v1793_v10 = vpop.f32.mrb[4].mxu1 }
 0x256   :  { %v1752_v12 = vpop.f32.mrb[0].mxu0  ;;  %v1795_v14 = vpop.f32.mrb[5].mxu1  ;;  %v1890_v16 = vmul.f32 %v1793_v10, %v2264_v7 }
 0x257   :  { %v2030_v15 = vadd.f32 %v1752_v12, %v567_v60  ;;  %v1754_v0 = vpop.f32.mrb[1].mxu0  ;;  %v2027_v17 = vpack.c.bf16 %v1795_v14, %v1793_v10  ;;  %v1797_v18 = vpop.f32.mrb[6].mxu1  ;;  %v1891_v33 = vmul.f32 %v1795_v14, %v2259_v61 }
 0x258   :  { %v2031_v20 = vadd.f32 %v1754_v0, %v569_v62  ;;  %v1756_v26 = vpop.f32.mrb[2].mxu0  ;;  %v1798_v28 = vpop.f32.mrb[7].mxu1  ;;  %v1909_v7 = vmul.f32 %v1890_v16, %v1793_v10 }
 0x259   :  { %v1888_v29 = vmul.f32 %v2030_v15, %v2256_v55  ;;  %v1757_v30 = vpop.f32.mrb[3].mxu0  ;;  %v1874_v39 = vrot.slane %v2027_v17, %v1866_v23  ;;  %v1897_v55 = vsel %vm349_vm1, %v1890_v16, 0.0  ;;  %v1899_v49 = vsel %vm349_vm1, %v1891_v33, 0.0 }
 0x25a   :  { %v2026_v31 = vpack.c.bf16 %v2031_v20, %v2030_v15  ;;  %v1889_v32 = vmul.f32 %v2031_v20, %v2252_v46  ;;  %v1910_v46 = vmul.f32 %v1891_v33, %v1795_v14  ;;  %v1916_v48 = vsel %vm349_vm1, %v1909_v7, 0.0 }
 0x25b   :  { %v1894_v34 = vsel %vm349_vm1, %v1888_v29, 0.0  ;;  %v1907_v35 = vmul.f32 %v2030_v15, %v1888_v29 }
 0x25c   :  { %v1867_v36 = vrot.slane %v2026_v31, %v1866_v23  ;;  %v1895_v37 = vsel %vm349_vm1, %v1889_v32, 0.0  ;;  %v1908_v38 = vmul.f32 %v2031_v20, %v1889_v32  ;;  %v1918_v19 = vsel %vm349_vm1, %v1910_v46, 0.0 }
 0x25d   :  { %v1913_v6 = vsel %vm349_vm1, %v1907_v35, 0.0  ;;  %v1896_v40 = vadd.f32 %v1895_v37, %v1894_v34 }
 0x25e   :  { %v1914_v41 = vsel %vm349_vm1, %v1908_v38, 0.0  ;;  %v1875_v42 = vcombine.low %v1867_v36, %v1874_v39  ;;  %v1834_v43 = vpop.f32.mrb[4].mxu0 }
 0x25f   :  { %v1915_v61 = vadd.f32 %v1914_v41, %v1913_v6  ;;  %v2032_v44 = vadd.f32 %v1834_v43, %v649_v27  ;;  %v1836_v45 = vpop.f32.mrb[5].mxu0  ;;  %v1898_v47 = vadd.f32 %v1897_v55, %v1896_v40 }
 0x260   :  { %v2033_v50 = vadd.f32 %v1836_v45, %v651_v2  ;;  %1886 = vst [vmem:[%s2567_s9] sm:$0xff] %v1875_v42  ;;  %v1838_v51 = vpop.f32.mrb[6].mxu0 }
 0x261   :  { %v1892_v13 = vmul.f32 %v2032_v44, %v2278_v22  ;;  %v1839_v52 = vpop.f32.mrb[7].mxu0  ;;  %v1900_v53 = vadd.f32 %v1899_v49, %v1898_v47  ;;  %v1917_v54 = vadd.f32 %v1916_v48, %v1915_v61 }
 0x262   :  { %v2028_v24 = vpack.c.bf16 %v2033_v50, %v2032_v44  ;;  %v1893_v56 = vmul.f32 %v2033_v50, %v2267_v11 }
 0x263   :  { %v1911_v25 = vmul.f32 %v2032_v44, %v1892_v13  ;;  %v1901_v57 = vsel %vm349_vm1, %v1892_v13, 0.0  ;;  %v1919_v58 = vadd.f32 %v1918_v19, %v1917_v54 }
 0x264   :  { %2029 = vst.sshfl [vmem:[%s2567_s9 + $0x8] sm:$0x33 pattern:$0x76325410] %v2028_v24  ;;  %v1902_v21 = vadd.f32 %v1901_v57, %v1900_v53  ;;  %v1903_v59 = vsel %vm349_vm1, %v1893_v56, 0.0  ;;  %v1912_v22 = vmul.f32 %v2033_v50, %v1893_v56 }
 0x265   :  { %v1920_v60 = vsel %vm349_vm1, %v1911_v25, 0.0 }
 0x266   :  { %v1904_v62 = vadd.f32 %v1903_v59, %v1902_v21  ;;  %v1921_v63 = vadd.f32 %v1920_v60, %v1919_v58  ;;  %v1922_v1 = vsel %vm349_vm1, %v1912_v22, 0.0 }
 0x268   :  { %1905 = vadd.xlane.f32.xlu0 %v1904_v62  ;;  %v1923_v11 = vadd.f32 %v1922_v1, %v1921_v63 }
 0x26a   :  { %1924 = vadd.xlane.f32.xlu1 %v1923_v11 }
 0x2f5   :  { %v1906_v27 = vpop.xlane.xlu0 %1905 }
 0x2f7   :  { %v1925_v2 = vpop.xlane.xlu1 %1924 }
 0x2f8   :  { %v1927_v3 = vsel %vm845_vm5, %v1906_v27, %v1925_v2 }
 0x2f9   :  { %1929 = vst.msk [vmem:[%s2568_s10] sm:$0xf] %vm1928_vm10, %v1927_v3 }

</bundles_post_ra>
